<compile_context>
chip_gen: v6e
topology: v6e:2x2x1
jax: 0.10.0
libtpu: 0.0.40
codegen_flags: <defaults>
</compile_context>

<pallas_src>
import math
from functools import partial

import jax
import jax.numpy as jnp
from jax.experimental import pallas as pl
from jax.experimental.pallas import tpu as pltpu


def _encoder_layer_kernel(
    src_ref, pos_ref,              # (S, bb, D)   bf16
    wqkv_ref, bqkv_ref,            # (2D, 3E) bf16, (1, 3E) f32
    wout_ref, bout_ref,            # (E, D)  bf16, (1, D)  f32
    w1_ref, b1_ref,                # (D, F)  bf16, (1, F)  f32
    w2_ref, b2_ref,                # (F, D)  bf16, (1, D)  f32
    ln_ref,                        # (4, D)  f32: [gamma1, beta1, gamma2, beta2]
    out_ref,                       # (S, bb, D) f32
    attn_ref,                      # VMEM scratch (bb, S, E) bf16
    *, nhead,
):
    f32 = jnp.float32
    S, bb, D = src_ref.shape
    E = 2 * D
    hd = E // nhead
    rows = bb * S
    cdt = wqkv_ref.dtype                     # MXU operand dtype (bf16)

    # (S, bb, D) -> (bb*S, D): batch-major rows so attention row-groups are
    # contiguous.  In-kernel reorder; no wrapper HBM transpose passes.
    x = jnp.transpose(src_ref[...].astype(f32), (1, 0, 2)).reshape(rows, D)
    p = jnp.transpose(pos_ref[...].astype(f32), (1, 0, 2)).reshape(rows, D)

    # Fused (conditional proj o in_proj) QKV: ONE (rows, 2D) @ (2D, 3E) matmul
    # over the lane-concatenated [x | pos] operand.  Columns are [Q | K | V];
    # 1/sqrt(hd) is already folded into the Q columns / bias.
    xp = jnp.concatenate([x, p], axis=1).astype(cdt)             # (rows, 2D)
    qkv = (jnp.dot(xp, wqkv_ref[...], preferred_element_type=f32)
           + bqkv_ref[...])                                      # (rows, 3E) f32
    qkv_c = qkv.astype(cdt)                                      # hoisted cast

    # Multi-head self-attention.  Matmuls are batched over the bb batch
    # elements of this step; only the short head loop is unrolled, and each
    # head's output lands at its lane offset in the (bb, S, E) scratch so the
    # per-head values die at the store (bounded live ranges).
    # TODO(synk): flash-style K/V blocking for large S (>~512 on v7x).
    for h in range(nhead):
        lo = h * hd
        q_h = qkv_c[:, lo:lo + hd].reshape(bb, S, hd)
        k_h = qkv_c[:, E + lo:E + lo + hd].reshape(bb, S, hd)
        v_h = qkv_c[:, 2 * E + lo:2 * E + lo + hd].reshape(bb, S, hd)
        s = jnp.einsum('bqd,bkd->bqk', q_h, k_h,
                       preferred_element_type=f32)               # (bb, S, S)
        s = s - jnp.max(s, axis=-1, keepdims=True)
        e = jnp.exp(s)
        pr = e * pl.reciprocal(jnp.sum(e, axis=-1, keepdims=True), approx=True)
        o_h = jnp.einsum('bqk,bkd->bqd', pr.astype(cdt), v_h,
                         preferred_element_type=f32)             # (bb, S, hd)
        attn_ref[:, :, lo:lo + hd] = o_h.astype(cdt)

    # ONE wide out-projection (weights already truncated to the first D cols).
    src2 = (jnp.dot(attn_ref[...].reshape(rows, E), wout_ref[...],
                    preferred_element_type=f32) + bout_ref[...])  # (rows, D)

    ln = ln_ref[...]

    def layer_norm(v, g, beta):
        mu = jnp.mean(v, axis=-1, keepdims=True)
        var = jnp.mean((v - mu) * (v - mu), axis=-1, keepdims=True)
        return (v - mu) * jax.lax.rsqrt(var + 1e-5) * g + beta

    # Dropout layers are identity (eval mode); attn_mask / key_padding_mask
    # are None in forward_post and are not supported here.
    x1 = layer_norm(x + src2, ln[0:1], ln[1:2])
    h1 = jnp.maximum(
        jnp.dot(x1.astype(cdt), w1_ref[...], preferred_element_type=f32)
        + b1_ref[...], 0.0)
    ffn = (jnp.dot(h1.astype(cdt), w2_ref[...], preferred_element_type=f32)
           + b2_ref[...])
    y = layer_norm(x1 + ffn, ln[2:3], ln[3:4])

    # Store back in the module's (S, bb, D) layout (lane-dense when D % 128
    # == 0, which holds at real model sizes).
    out_ref[...] = jnp.transpose(y.reshape(bb, S, D),
                                 (1, 0, 2)).astype(out_ref.dtype)


def _chip_info():
    """(num_tensorcores, per-step VMEM budget bytes) for the local chip."""
    try:
        kind = jax.devices()[0].device_kind.lower()
    except Exception:
        kind = ""
    if "v7" in kind or "tpu7" in kind:
        return 2, 40 << 20            # 64 MiB physical VMEM, 2 TCs per chip
    return 1, 72 << 20                # v5e / v6e: 128 MiB physical, 1 TC


def _vmem_bytes_estimate(bb, S, D, E, F, io_bytes=2):
    """Rough per-grid-step VMEM footprint (blocks + weights + intermediates)."""
    rows = bb * S
    blocks = 2 * S * bb * D * io_bytes * 2 + S * bb * D * 4 * 2
    weights = (2 * D * 3 * E + E * D + D * F + F * D) * 2 \
              + (3 * E + 2 * D + F + 4 * D) * 4
    inter = (rows * D * 4 * 6                  # x, p, src2, x1, ffn, y (f32)
             + rows * 2 * D * 2                # [x|p] bf16
             + rows * 3 * E * (4 + 2)          # qkv f32 + bf16
             + rows * E * 2                    # attention scratch
             + bb * S * S * 4 * 3              # per-head scores / exp / probs
             + rows * F * (4 + 2))             # FFN hidden f32 + bf16
    return blocks + weights + inter


def _pick_batch_block(B, S, D, E, F, *, n_cores, vmem_budget, target_rows=512):
    """Batch elements per grid step.  Because the batch dim is the second-minor
    dim of the (S, B, D) blocks, bb must divide B and be a multiple of 8 (or
    equal B)."""
    cands = [d for d in range(1, B + 1)
             if B % d == 0 and (d == B or d % 8 == 0)]
    fit = [d for d in cands
           if _vmem_bytes_estimate(d, S, D, E, F) <= vmem_budget] or cands[:1]
    # Largest block whose row count stays near the target: fills the MXU M dim
    # and amortizes the ~0.35us/step grid overhead.
    pick = max([d for d in fit if d * S <= max(target_rows, S)] or [min(fit)])
    if n_cores > 1:
        # Prefer >= n_cores grid steps so "parallel" shards across TensorCores,
        # as long as the tile stays MXU-dense.
        par = [d for d in fit if B // d >= n_cores and d * S >= 128]
        if par:
            pick = min(pick, max(par))
    return pick


def conditional_encoder_layer(src, pos, params, nhead, *,
                              compute_dtype=jnp.bfloat16):
    """src, pos: (S, B, D) (PyTorch seq-first layout).  Returns (S, B, D) f32."""
    S, B, D = src.shape
    E = 2 * D
    F = params['w1'].shape[0]
    dh = D // nhead            # content half per head
    hd = E // nhead            # full head dim
    HI = jax.lax.Precision.HIGHEST
    scale = 1.0 / math.sqrt(hd)

    # Fold the per-head [content | positional] concat into a column permutation
    # of the MHA in_proj weights.
    perm = []
    for j in range(E):
        h, r = divmod(j, hd)
        perm.append(h * dh + r if r < dh else D + h * dh + (r - dh))
    perm = jnp.asarray(perm, dtype=jnp.int32)

    def permute_split(W):      # (E, E) -> content half (E, D), positional half (E, D)
        Wp = jnp.zeros_like(W).at[:, perm].set(W)
        return Wp[:, :D], Wp[:, D:]

    Wq, Wk, Wv = params['in_w'][:E], params['in_w'][E:2 * E], params['in_w'][2 * E:]
    bq, bk, bv = params['in_b'][:E], params['in_b'][E:2 * E], params['in_b'][2 * E:]

    # Compose (conditional projection) o (in_proj) into single (D, E) maps.
    def fuse(Wc, bc, Wp_, bp_, Win, bin_):
        win_c, win_p = permute_split(Win)                        # (E, D) each
        a_src = jnp.dot(Wc.T, win_c.T, precision=HI)             # (D, E)
        a_pos = jnp.dot(Wp_.T, win_p.T, precision=HI)            # (D, E)
        bias = (jnp.dot(bc, win_c.T, precision=HI)
                + jnp.dot(bp_, win_p.T, precision=HI) + bin_)    # (E,)
        return a_src, a_pos, bias

    aq_s, aq_p, bq_f = fuse(params['wqc'], params['bqc'],
                            params['wqps'], params['bqps'], Wq, bq)
    ak_s, ak_p, bk_f = fuse(params['wkc'], params['bkc'],
                            params['wkp'], params['bkp'], Wk, bk)
    av_s, av_p, bv_f = fuse(params['wvc'], params['bvc'],
                            params['wvp'], params['bvp'], Wv, bv)

    w_src_qkv = jnp.concatenate([aq_s * scale, ak_s, av_s], axis=1)   # (D, 3E)
    w_pos_qkv = jnp.concatenate([aq_p * scale, ak_p, av_p], axis=1)   # (D, 3E)
    # Stack src-rows over pos-rows so ONE matmul with the lane-concatenated
    # [x | pos] operand does both conditional paths at K = 2D.
    w_xp_qkv = jnp.concatenate([w_src_qkv, w_pos_qkv], axis=0)        # (2D, 3E)
    b_qkv = jnp.concatenate([bq_f * scale, bk_f, bv_f]).reshape(1, 3 * E)

    w_out = params['out_w'][:D].T                 # (E, D): out_proj truncated to :D
    b_out = params['out_b'][:D].reshape(1, D)
    w1 = params['w1'].T                           # (D, F)
    b1 = params['b1'].reshape(1, F)
    w2 = params['w2'].T                           # (F, D)
    b2 = params['b2'].reshape(1, D)
    ln = jnp.stack([params['g1'], params['be1'],
                    params['g2'], params['be2']]).astype(jnp.float32)

    cdt = compute_dtype
    w_xp_qkv = w_xp_qkv.astype(cdt)
    w_out_c = w_out.astype(cdt)
    w1_c = w1.astype(cdt)
    w2_c = w2.astype(cdt)
    b_qkv = b_qkv.astype(jnp.float32)
    b_out = b_out.astype(jnp.float32)
    b1 = b1.astype(jnp.float32)
    b2 = b2.astype(jnp.float32)

    # Activations travel to the kernel in bf16 (callers that already hold bf16
    # activations skip this cast); the f32 residual path is rebuilt in-kernel.
    src_c = src.astype(cdt)
    pos_c = pos.astype(cdt)

    n_cores, vmem_budget = _chip_info()
    bb = _pick_batch_block(B, S, D, E, F,
                           n_cores=n_cores, vmem_budget=vmem_budget)
    est = _vmem_bytes_estimate(bb, S, D, E, F)
    vmem_limit = int(min(vmem_budget, max(32 << 20, 2 * est)))

    def const(shape):
        n = len(shape)

        def idx(i):
            return (0,) * n

        # Grid-invariant weights: single buffer (no pointless double-buffering).
        return pl.BlockSpec(shape, idx, pipeline_mode=pl.Buffered(1))

    out = pl.pallas_call(
        partial(_encoder_layer_kernel, nhead=nhead),
        out_shape=jax.ShapeDtypeStruct((S, B, D), jnp.float32),
        grid=(B // bb,),
        in_specs=[
            pl.BlockSpec((S, bb, D), lambda i: (0, i, 0)),   # src
            pl.BlockSpec((S, bb, D), lambda i: (0, i, 0)),   # pos
            const((2 * D, 3 * E)), const((1, 3 * E)),
            const((E, D)), const((1, D)),
            const((D, F)), const((1, F)),
            const((F, D)), const((1, D)),
            const((4, D)),
        ],
        out_specs=pl.BlockSpec((S, bb, D), lambda i: (0, i, 0)),
        scratch_shapes=[pltpu.VMEM((bb, S, E), cdt)],
        compiler_params=pltpu.CompilerParams(
            dimension_semantics=("parallel",),
            vmem_limit_bytes=vmem_limit),
    )(src_c, pos_c, w_xp_qkv, b_qkv, w_out_c, b_out, w1_c, b1, w2_c, b2, ln)

    return out


def init_params(key, d_model, dim_ff):
    """Deterministic synthetic parameters with the module's shapes."""
    D, F, E = d_model, dim_ff, 2 * d_model
    keys = iter(jax.random.split(key, 32))

    def w(shape, scale=0.1):
        return (scale * jax.random.normal(next(keys), shape)).astype(jnp.float32)

    return dict(
        wqc=w((D, D)), bqc=w((D,)),
        wkc=w((D, D)), bkc=w((D,)),
        wvc=w((D, D)), bvc=w((D,)),
        wqps=w((D, D)), bqps=w((D,)),
        wkp=w((D, D)), bkp=w((D,)),
        wvp=w((D, D)), bvp=w((D,)),
        in_w=w((3 * E, E)), in_b=w((3 * E,)),
        out_w=w((E, E)), out_b=w((E,)),
        w1=w((F, D)), b1=w((F,)),
        w2=w((D, F)), b2=w((D,)),
        g1=1.0 + w((D,)), be1=w((D,)),
        g2=1.0 + w((D,)), be2=w((D,)),
    )


def reference_forward(src, pos, p, nhead):
    """Pure-JAX mirror of the PyTorch forward_post (eval mode), for checking."""
    S, B, D = src.shape
    E = 2 * D
    dh = D // nhead
    hd = E // nhead
    HI = jax.lax.Precision.HIGHEST

    def lin(x, w, b):
        return jnp.einsum('sbi,oi->sbo', x, w, precision=HI) + b

    qc = lin(src, p['wqc'], p['bqc'])
    kc = lin(src, p['wkc'], p['bkc'])
    vc = lin(src, p['wvc'], p['bvc'])
    qp = lin(pos, p['wqps'], p['bqps'])
    kp = lin(pos, p['wkp'], p['bkp'])
    vp = lin(pos, p['wvp'], p['bvp'])

    def cat(a, b_):
        a = a.reshape(S, B, nhead, dh)
        b_ = b_.reshape(S, B, nhead, dh)
        return jnp.concatenate([a, b_], axis=3).reshape(S, B, E)

    q, k, v = cat(qc, qp), cat(kc, kp), cat(vc, vp)

    Wq, Wk, Wv = p['in_w'][:E], p['in_w'][E:2 * E], p['in_w'][2 * E:]
    bq, bk, bv = p['in_b'][:E], p['in_b'][E:2 * E], p['in_b'][2 * E:]
    Q = jnp.einsum('sbi,oi->sbo', q, Wq, precision=HI) + bq
    K = jnp.einsum('sbi,oi->sbo', k, Wk, precision=HI) + bk
    V = jnp.einsum('sbi,oi->sbo', v, Wv, precision=HI) + bv

    Qh = Q.reshape(S, B, nhead, hd) * (1.0 / math.sqrt(hd))
    Kh = K.reshape(S, B, nhead, hd)
    Vh = V.reshape(S, B, nhead, hd)
    scores = jnp.einsum('sbhd,tbhd->bhst', Qh, Kh, precision=HI)
    attn = jax.nn.softmax(scores, axis=-1)
    o = jnp.einsum('bhst,tbhd->sbhd', attn, Vh, precision=HI).reshape(S, B, E)
    o = jnp.einsum('sbi,oi->sbo', o, p['out_w'], precision=HI) + p['out_b']
    src2 = o[:, :, :D]

    def layer_norm(x, g, b):
        mu = jnp.mean(x, axis=-1, keepdims=True)
        var = jnp.mean((x - mu) ** 2, axis=-1, keepdims=True)
        return (x - mu) / jnp.sqrt(var + 1e-5) * g + b

    x = layer_norm(src + src2, p['g1'], p['be1'])
    hmid = jax.nn.relu(jnp.einsum('sbd,fd->sbf', x, p['w1'], precision=HI) + p['b1'])
    ffn = jnp.einsum('sbf,df->sbd', hmid, p['w2'], precision=HI) + p['b2']
    x = layer_norm(x + ffn, p['g2'], p['be2'])
    return x


if __name__ == "__main__":
    S, B, D, NHEAD, FF = 8, 2, 32, 4, 64

    key = jax.random.PRNGKey(0)
    k1, k2, k3 = jax.random.split(key, 3)
    # Inputs are snapped to bf16-representable values so the bf16 activation
    # transfer into the kernel does not perturb the comparison vs. the f32
    # reference (weight-quantization / bf16-matmul drift remains).
    src = jax.random.normal(k1, (S, B, D), dtype=jnp.float32)
    src = src.astype(jnp.bfloat16).astype(jnp.float32)
    pos = jax.random.normal(k2, (S, B, D), dtype=jnp.float32)
    pos = pos.astype(jnp.bfloat16).astype(jnp.float32)
    params = init_params(k3, D, FF)

    out = conditional_encoder_layer(src, pos, params, NHEAD)
    out = jax.block_until_ready(out)
    assert out.shape == (S, B, D)

    ref = reference_forward(src, pos, params, NHEAD)
    max_err = float(jnp.max(jnp.abs(out - ref)))
    # bf16 MXU operands + bf16-quantized composed weights: ~1e-2 level drift.
    if max_err > 4e-2:
        raise AssertionError(f"kernel/reference mismatch, max abs err={max_err}")

    print("KERNEL_OK")
</pallas_src>

<mosaic_0001>
module attributes {stable_mosaic.version = 11 : i64} {
  func.func @_encoder_layer_kernel(%arg0: i32, %arg1: memref<8x2x32xbf16, #tpu.memory_space<vmem>>, %arg2: memref<8x2x32xbf16, #tpu.memory_space<vmem>>, %arg3: memref<64x192xbf16, #tpu.memory_space<vmem>>, %arg4: memref<1x192xf32, #tpu.memory_space<vmem>>, %arg5: memref<64x32xbf16, #tpu.memory_space<vmem>>, %arg6: memref<1x32xf32, #tpu.memory_space<vmem>>, %arg7: memref<32x64xbf16, #tpu.memory_space<vmem>>, %arg8: memref<1x64xf32, #tpu.memory_space<vmem>>, %arg9: memref<64x32xbf16, #tpu.memory_space<vmem>>, %arg10: memref<1x32xf32, #tpu.memory_space<vmem>>, %arg11: memref<4x32xf32, #tpu.memory_space<vmem>>, %arg12: memref<8x2x32xf32, #tpu.memory_space<vmem>>, %arg13: memref<2x8x64xbf16, #tpu.memory_space<vmem>>) attributes {dimension_semantics = [#tpu.dimension_semantics<parallel>], iteration_bounds = array<i64: 1>, scalar_prefetch = 0 : i64, scratch_operands = 1 : i64, tpu.core_type = #tpu.core_type<tc>, window_params = [{transform_indices = @transform_0, window_bounds = array<i64: 8, 2, 32>}, {transform_indices = @transform_1, window_bounds = array<i64: 8, 2, 32>}, {pipeline_mode = #tpu.pipeline_mode<synchronous>, transform_indices = @transform_2, window_bounds = array<i64: 64, 192>}, {pipeline_mode = #tpu.pipeline_mode<synchronous>, transform_indices = @transform_3, window_bounds = array<i64: 1, 192>}, {pipeline_mode = #tpu.pipeline_mode<synchronous>, transform_indices = @transform_4, window_bounds = array<i64: 64, 32>}, {pipeline_mode = #tpu.pipeline_mode<synchronous>, transform_indices = @transform_5, window_bounds = array<i64: 1, 32>}, {pipeline_mode = #tpu.pipeline_mode<synchronous>, transform_indices = @transform_6, window_bounds = array<i64: 32, 64>}, {pipeline_mode = #tpu.pipeline_mode<synchronous>, transform_indices = @transform_7, window_bounds = array<i64: 1, 64>}, {pipeline_mode = #tpu.pipeline_mode<synchronous>, transform_indices = @transform_8, window_bounds = array<i64: 64, 32>}, {pipeline_mode = #tpu.pipeline_mode<synchronous>, transform_indices = @transform_9, window_bounds = array<i64: 1, 32>}, {pipeline_mode = #tpu.pipeline_mode<synchronous>, transform_indices = @transform_10, window_bounds = array<i64: 4, 32>}, {transform_indices = @transform_11, window_bounds = array<i64: 8, 2, 32>}]} {
    %c0 = arith.constant 0 : index
    %c0_0 = arith.constant 0 : index
    %c0_1 = arith.constant 0 : index
    %0 = vector.load %arg1[%c0, %c0_0, %c0_1] : memref<8x2x32xbf16, #tpu.memory_space<vmem>>, vector<8x2x32xbf16>
    %1 = arith.extf %0 : vector<8x2x32xbf16> to vector<8x2x32xf32>
    %2 = tpu.transpose %1, [1, 0, 2] : vector<8x2x32xf32> -> vector<2x8x32xf32>
    %3 = vector.shape_cast %2 : vector<2x8x32xf32> to vector<16x32xf32>
    %c0_2 = arith.constant 0 : index
    %c0_3 = arith.constant 0 : index
    %c0_4 = arith.constant 0 : index
    %4 = vector.load %arg2[%c0_2, %c0_3, %c0_4] : memref<8x2x32xbf16, #tpu.memory_space<vmem>>, vector<8x2x32xbf16>
    %5 = arith.extf %4 : vector<8x2x32xbf16> to vector<8x2x32xf32>
    %6 = tpu.transpose %5, [1, 0, 2] : vector<8x2x32xf32> -> vector<2x8x32xf32>
    %7 = vector.shape_cast %6 : vector<2x8x32xf32> to vector<16x32xf32>
    %8 = tpu.concatenate %3, %7 in 1 : vector<16x32xf32>, vector<16x32xf32> -> vector<16x64xf32>
    %9 = arith.truncf %8 : vector<16x64xf32> to vector<16x64xbf16>
    %c0_5 = arith.constant 0 : index
    %c0_6 = arith.constant 0 : index
    %10 = vector.load %arg3[%c0_5, %c0_6] : memref<64x192xbf16, #tpu.memory_space<vmem>>, vector<64x192xbf16>
    %cst = arith.constant dense<0.000000e+00> : vector<16x192xf32>
    %11 = tpu.matmul %9, %10, %cst {dimension_numbers = #tpu.dot_dimension_numbers<[1], [0], [0], [1], [0, 0, 1, 1], [], []>} : vector<16x64xbf16>, vector<64x192xbf16>, vector<16x192xf32> -> vector<16x192xf32>
    %c0_7 = arith.constant 0 : index
    %c0_8 = arith.constant 0 : index
    %12 = vector.load %arg4[%c0_7, %c0_8] : memref<1x192xf32, #tpu.memory_space<vmem>>, vector<1x192xf32>
    %13 = vector.broadcast %12 : vector<1x192xf32> to vector<16x192xf32>
    %14 = arith.addf %11, %13 : vector<16x192xf32>
    %15 = arith.truncf %14 : vector<16x192xf32> to vector<16x192xbf16>
    %16 = vector.extract_strided_slice %15 {offsets = [0, 0], sizes = [16, 16], strides = [1, 1]} : vector<16x192xbf16> to vector<16x16xbf16>
    %17 = vector.shape_cast %16 : vector<16x16xbf16> to vector<2x8x16xbf16>
    %18 = vector.extract_strided_slice %15 {offsets = [0, 64], sizes = [16, 16], strides = [1, 1]} : vector<16x192xbf16> to vector<16x16xbf16>
    %19 = vector.shape_cast %18 : vector<16x16xbf16> to vector<2x8x16xbf16>
    %20 = vector.extract_strided_slice %15 {offsets = [0, 128], sizes = [16, 16], strides = [1, 1]} : vector<16x192xbf16> to vector<16x16xbf16>
    %21 = vector.shape_cast %20 : vector<16x16xbf16> to vector<2x8x16xbf16>
    "tpu.trace_start"() <{level = 10 : i32, message = "bqd,bkd->bqk"}> : () -> ()
    %cst_9 = arith.constant dense<0.000000e+00> : vector<2x8x8xf32>
    %22 = tpu.matmul %17, %19, %cst_9 {dimension_numbers = #tpu.dot_dimension_numbers<[2], [2], [1], [1], [0, 0, 0, 1, 1, 1], [0], [0]>} : vector<2x8x16xbf16>, vector<2x8x16xbf16>, vector<2x8x8xf32> -> vector<2x8x8xf32>
    "tpu.trace_stop"() : () -> ()
    %cst_10 = arith.constant dense<0xFF800000> : vector<2x8xf32>
    %23 = vector.multi_reduction <maximumf>, %22, %cst_10 [2] : vector<2x8x8xf32> to vector<2x8xf32>
    %24 = vector.shape_cast %23 : vector<2x8xf32> to vector<2x8x1xf32>
    %25 = vector.broadcast %24 : vector<2x8x1xf32> to vector<2x8x8xf32>
    %26 = arith.subf %22, %25 : vector<2x8x8xf32>
    %27 = math.exp %26 : vector<2x8x8xf32>
    %cst_11 = arith.constant dense<0.000000e+00> : vector<2x8xf32>
    %28 = vector.multi_reduction <add>, %27, %cst_11 [2] : vector<2x8x8xf32> to vector<2x8xf32>
    %29 = vector.shape_cast %28 : vector<2x8xf32> to vector<2x8x1xf32>
    %30 = tpu.reciprocal %29 {approx = true} : vector<2x8x1xf32> -> vector<2x8x1xf32>
    %31 = vector.broadcast %30 : vector<2x8x1xf32> to vector<2x8x8xf32>
    %32 = arith.mulf %27, %31 : vector<2x8x8xf32>
    %33 = arith.truncf %32 : vector<2x8x8xf32> to vector<2x8x8xbf16>
    "tpu.trace_start"() <{level = 10 : i32, message = "bqk,bkd->bqd"}> : () -> ()
    %cst_12 = arith.constant dense<0.000000e+00> : vector<2x8x16xf32>
    %34 = tpu.matmul %33, %21, %cst_12 {dimension_numbers = #tpu.dot_dimension_numbers<[2], [1], [1], [2], [0, 0, 0, 1, 1, 2], [0], [0]>} : vector<2x8x8xbf16>, vector<2x8x16xbf16>, vector<2x8x16xf32> -> vector<2x8x16xf32>
    "tpu.trace_stop"() : () -> ()
    %35 = arith.truncf %34 : vector<2x8x16xf32> to vector<2x8x16xbf16>
    %c0_13 = arith.constant 0 : index
    %c0_14 = arith.constant 0 : index
    %c0_15 = arith.constant 0 : index
    %36 = vector.load %arg13[%c0_13, %c0_14, %c0_15] : memref<2x8x64xbf16, #tpu.memory_space<vmem>>, vector<2x8x16xbf16>
    tpu.vector_store %arg13[%c0_13, %c0_14, %c0_15], %35 {strides = array<i32>} : memref<2x8x64xbf16, #tpu.memory_space<vmem>>, vector<2x8x16xbf16>,
    %37 = vector.extract_strided_slice %15 {offsets = [0, 16], sizes = [16, 16], strides = [1, 1]} : vector<16x192xbf16> to vector<16x16xbf16>
    %38 = vector.shape_cast %37 : vector<16x16xbf16> to vector<2x8x16xbf16>
    %39 = vector.extract_strided_slice %15 {offsets = [0, 80], sizes = [16, 16], strides = [1, 1]} : vector<16x192xbf16> to vector<16x16xbf16>
    %40 = vector.shape_cast %39 : vector<16x16xbf16> to vector<2x8x16xbf16>
    %41 = vector.extract_strided_slice %15 {offsets = [0, 144], sizes = [16, 16], strides = [1, 1]} : vector<16x192xbf16> to vector<16x16xbf16>
    %42 = vector.shape_cast %41 : vector<16x16xbf16> to vector<2x8x16xbf16>
    "tpu.trace_start"() <{level = 10 : i32, message = "bqd,bkd->bqk"}> : () -> ()
    %cst_16 = arith.constant dense<0.000000e+00> : vector<2x8x8xf32>
    %43 = tpu.matmul %38, %40, %cst_16 {dimension_numbers = #tpu.dot_dimension_numbers<[2], [2], [1], [1], [0, 0, 0, 1, 1, 1], [0], [0]>} : vector<2x8x16xbf16>, vector<2x8x16xbf16>, vector<2x8x8xf32> -> vector<2x8x8xf32>
    "tpu.trace_stop"() : () -> ()
    %cst_17 = arith.constant dense<0xFF800000> : vector<2x8xf32>
    %44 = vector.multi_reduction <maximumf>, %43, %cst_17 [2] : vector<2x8x8xf32> to vector<2x8xf32>
    %45 = vector.shape_cast %44 : vector<2x8xf32> to vector<2x8x1xf32>
    %46 = vector.broadcast %45 : vector<2x8x1xf32> to vector<2x8x8xf32>
    %47 = arith.subf %43, %46 : vector<2x8x8xf32>
    %48 = math.exp %47 : vector<2x8x8xf32>
    %cst_18 = arith.constant dense<0.000000e+00> : vector<2x8xf32>
    %49 = vector.multi_reduction <add>, %48, %cst_18 [2] : vector<2x8x8xf32> to vector<2x8xf32>
    %50 = vector.shape_cast %49 : vector<2x8xf32> to vector<2x8x1xf32>
    %51 = tpu.reciprocal %50 {approx = true} : vector<2x8x1xf32> -> vector<2x8x1xf32>
    %52 = vector.broadcast %51 : vector<2x8x1xf32> to vector<2x8x8xf32>
    %53 = arith.mulf %48, %52 : vector<2x8x8xf32>
    %54 = arith.truncf %53 : vector<2x8x8xf32> to vector<2x8x8xbf16>
    "tpu.trace_start"() <{level = 10 : i32, message = "bqk,bkd->bqd"}> : () -> ()
    %cst_19 = arith.constant dense<0.000000e+00> : vector<2x8x16xf32>
    %55 = tpu.matmul %54, %42, %cst_19 {dimension_numbers = #tpu.dot_dimension_numbers<[2], [1], [1], [2], [0, 0, 0, 1, 1, 2], [0], [0]>} : vector<2x8x8xbf16>, vector<2x8x16xbf16>, vector<2x8x16xf32> -> vector<2x8x16xf32>
    "tpu.trace_stop"() : () -> ()
    %56 = arith.truncf %55 : vector<2x8x16xf32> to vector<2x8x16xbf16>
    %c0_20 = arith.constant 0 : index
    %c0_21 = arith.constant 0 : index
    %c16 = arith.constant 16 : index
    %57 = vector.load %arg13[%c0_20, %c0_21, %c16] : memref<2x8x64xbf16, #tpu.memory_space<vmem>>, vector<2x8x16xbf16>
    tpu.vector_store %arg13[%c0_20, %c0_21, %c16], %56 {strides = array<i32>} : memref<2x8x64xbf16, #tpu.memory_space<vmem>>, vector<2x8x16xbf16>,
    %58 = vector.extract_strided_slice %15 {offsets = [0, 32], sizes = [16, 16], strides = [1, 1]} : vector<16x192xbf16> to vector<16x16xbf16>
    %59 = vector.shape_cast %58 : vector<16x16xbf16> to vector<2x8x16xbf16>
    %60 = vector.extract_strided_slice %15 {offsets = [0, 96], sizes = [16, 16], strides = [1, 1]} : vector<16x192xbf16> to vector<16x16xbf16>
    %61 = vector.shape_cast %60 : vector<16x16xbf16> to vector<2x8x16xbf16>
    %62 = vector.extract_strided_slice %15 {offsets = [0, 160], sizes = [16, 16], strides = [1, 1]} : vector<16x192xbf16> to vector<16x16xbf16>
    %63 = vector.shape_cast %62 : vector<16x16xbf16> to vector<2x8x16xbf16>
    "tpu.trace_start"() <{level = 10 : i32, message = "bqd,bkd->bqk"}> : () -> ()
    %cst_22 = arith.constant dense<0.000000e+00> : vector<2x8x8xf32>
    %64 = tpu.matmul %59, %61, %cst_22 {dimension_numbers = #tpu.dot_dimension_numbers<[2], [2], [1], [1], [0, 0, 0, 1, 1, 1], [0], [0]>} : vector<2x8x16xbf16>, vector<2x8x16xbf16>, vector<2x8x8xf32> -> vector<2x8x8xf32>
    "tpu.trace_stop"() : () -> ()
    %cst_23 = arith.constant dense<0xFF800000> : vector<2x8xf32>
    %65 = vector.multi_reduction <maximumf>, %64, %cst_23 [2] : vector<2x8x8xf32> to vector<2x8xf32>
    %66 = vector.shape_cast %65 : vector<2x8xf32> to vector<2x8x1xf32>
    %67 = vector.broadcast %66 : vector<2x8x1xf32> to vector<2x8x8xf32>
    %68 = arith.subf %64, %67 : vector<2x8x8xf32>
    %69 = math.exp %68 : vector<2x8x8xf32>
    %cst_24 = arith.constant dense<0.000000e+00> : vector<2x8xf32>
    %70 = vector.multi_reduction <add>, %69, %cst_24 [2] : vector<2x8x8xf32> to vector<2x8xf32>
    %71 = vector.shape_cast %70 : vector<2x8xf32> to vector<2x8x1xf32>
    %72 = tpu.reciprocal %71 {approx = true} : vector<2x8x1xf32> -> vector<2x8x1xf32>
    %73 = vector.broadcast %72 : vector<2x8x1xf32> to vector<2x8x8xf32>
    %74 = arith.mulf %69, %73 : vector<2x8x8xf32>
    %75 = arith.truncf %74 : vector<2x8x8xf32> to vector<2x8x8xbf16>
    "tpu.trace_start"() <{level = 10 : i32, message = "bqk,bkd->bqd"}> : () -> ()
    %cst_25 = arith.constant dense<0.000000e+00> : vector<2x8x16xf32>
    %76 = tpu.matmul %75, %63, %cst_25 {dimension_numbers = #tpu.dot_dimension_numbers<[2], [1], [1], [2], [0, 0, 0, 1, 1, 2], [0], [0]>} : vector<2x8x8xbf16>, vector<2x8x16xbf16>, vector<2x8x16xf32> -> vector<2x8x16xf32>
    "tpu.trace_stop"() : () -> ()
    %77 = arith.truncf %76 : vector<2x8x16xf32> to vector<2x8x16xbf16>
    %c0_26 = arith.constant 0 : index
    %c0_27 = arith.constant 0 : index
    %c32 = arith.constant 32 : index
    %78 = vector.load %arg13[%c0_26, %c0_27, %c32] : memref<2x8x64xbf16, #tpu.memory_space<vmem>>, vector<2x8x16xbf16>
    tpu.vector_store %arg13[%c0_26, %c0_27, %c32], %77 {strides = array<i32>} : memref<2x8x64xbf16, #tpu.memory_space<vmem>>, vector<2x8x16xbf16>,
    %79 = vector.extract_strided_slice %15 {offsets = [0, 48], sizes = [16, 16], strides = [1, 1]} : vector<16x192xbf16> to vector<16x16xbf16>
    %80 = vector.shape_cast %79 : vector<16x16xbf16> to vector<2x8x16xbf16>
    %81 = vector.extract_strided_slice %15 {offsets = [0, 112], sizes = [16, 16], strides = [1, 1]} : vector<16x192xbf16> to vector<16x16xbf16>
    %82 = vector.shape_cast %81 : vector<16x16xbf16> to vector<2x8x16xbf16>
    %83 = vector.extract_strided_slice %15 {offsets = [0, 176], sizes = [16, 16], strides = [1, 1]} : vector<16x192xbf16> to vector<16x16xbf16>
    %84 = vector.shape_cast %83 : vector<16x16xbf16> to vector<2x8x16xbf16>
    "tpu.trace_start"() <{level = 10 : i32, message = "bqd,bkd->bqk"}> : () -> ()
    %cst_28 = arith.constant dense<0.000000e+00> : vector<2x8x8xf32>
    %85 = tpu.matmul %80, %82, %cst_28 {dimension_numbers = #tpu.dot_dimension_numbers<[2], [2], [1], [1], [0, 0, 0, 1, 1, 1], [0], [0]>} : vector<2x8x16xbf16>, vector<2x8x16xbf16>, vector<2x8x8xf32> -> vector<2x8x8xf32>
    "tpu.trace_stop"() : () -> ()
    %cst_29 = arith.constant dense<0xFF800000> : vector<2x8xf32>
    %86 = vector.multi_reduction <maximumf>, %85, %cst_29 [2] : vector<2x8x8xf32> to vector<2x8xf32>
    %87 = vector.shape_cast %86 : vector<2x8xf32> to vector<2x8x1xf32>
    %88 = vector.broadcast %87 : vector<2x8x1xf32> to vector<2x8x8xf32>
    %89 = arith.subf %85, %88 : vector<2x8x8xf32>
    %90 = math.exp %89 : vector<2x8x8xf32>
    %cst_30 = arith.constant dense<0.000000e+00> : vector<2x8xf32>
    %91 = vector.multi_reduction <add>, %90, %cst_30 [2] : vector<2x8x8xf32> to vector<2x8xf32>
    %92 = vector.shape_cast %91 : vector<2x8xf32> to vector<2x8x1xf32>
    %93 = tpu.reciprocal %92 {approx = true} : vector<2x8x1xf32> -> vector<2x8x1xf32>
    %94 = vector.broadcast %93 : vector<2x8x1xf32> to vector<2x8x8xf32>
    %95 = arith.mulf %90, %94 : vector<2x8x8xf32>
    %96 = arith.truncf %95 : vector<2x8x8xf32> to vector<2x8x8xbf16>
    "tpu.trace_start"() <{level = 10 : i32, message = "bqk,bkd->bqd"}> : () -> ()
    %cst_31 = arith.constant dense<0.000000e+00> : vector<2x8x16xf32>
    %97 = tpu.matmul %96, %84, %cst_31 {dimension_numbers = #tpu.dot_dimension_numbers<[2], [1], [1], [2], [0, 0, 0, 1, 1, 2], [0], [0]>} : vector<2x8x8xbf16>, vector<2x8x16xbf16>, vector<2x8x16xf32> -> vector<2x8x16xf32>
    "tpu.trace_stop"() : () -> ()
    %98 = arith.truncf %97 : vector<2x8x16xf32> to vector<2x8x16xbf16>
    %c0_32 = arith.constant 0 : index
    %c0_33 = arith.constant 0 : index
    %c48 = arith.constant 48 : index
    %99 = vector.load %arg13[%c0_32, %c0_33, %c48] : memref<2x8x64xbf16, #tpu.memory_space<vmem>>, vector<2x8x16xbf16>
    tpu.vector_store %arg13[%c0_32, %c0_33, %c48], %98 {strides = array<i32>} : memref<2x8x64xbf16, #tpu.memory_space<vmem>>, vector<2x8x16xbf16>,
    %c0_34 = arith.constant 0 : index
    %c0_35 = arith.constant 0 : index
    %c0_36 = arith.constant 0 : index
    %100 = vector.load %arg13[%c0_34, %c0_35, %c0_36] : memref<2x8x64xbf16, #tpu.memory_space<vmem>>, vector<2x8x64xbf16>
    %101 = vector.shape_cast %100 : vector<2x8x64xbf16> to vector<16x64xbf16>
    %c0_37 = arith.constant 0 : index
    %c0_38 = arith.constant 0 : index
    %102 = vector.load %arg5[%c0_37, %c0_38] : memref<64x32xbf16, #tpu.memory_space<vmem>>, vector<64x32xbf16>
    %cst_39 = arith.constant dense<0.000000e+00> : vector<16x32xf32>
    %103 = tpu.matmul %101, %102, %cst_39 {dimension_numbers = #tpu.dot_dimension_numbers<[1], [0], [0], [1], [0, 0, 1, 1], [], []>} : vector<16x64xbf16>, vector<64x32xbf16>, vector<16x32xf32> -> vector<16x32xf32>
    %c0_40 = arith.constant 0 : index
    %c0_41 = arith.constant 0 : index
    %104 = vector.load %arg6[%c0_40, %c0_41] : memref<1x32xf32, #tpu.memory_space<vmem>>, vector<1x32xf32>
    %105 = vector.broadcast %104 : vector<1x32xf32> to vector<16x32xf32>
    %106 = arith.addf %103, %105 : vector<16x32xf32>
    %c0_42 = arith.constant 0 : index
    %c0_43 = arith.constant 0 : index
    %107 = vector.load %arg11[%c0_42, %c0_43] : memref<4x32xf32, #tpu.memory_space<vmem>>, vector<4x32xf32>
    %108 = arith.addf %3, %106 : vector<16x32xf32>
    %109 = vector.extract_strided_slice %107 {offsets = [0, 0], sizes = [1, 32], strides = [1, 1]} : vector<4x32xf32> to vector<1x32xf32>
    %110 = vector.extract_strided_slice %107 {offsets = [1, 0], sizes = [1, 32], strides = [1, 1]} : vector<4x32xf32> to vector<1x32xf32>
    %cst_44 = arith.constant dense<0.000000e+00> : vector<16xf32>
    %111 = vector.multi_reduction <add>, %108, %cst_44 [1] : vector<16x32xf32> to vector<16xf32>
    %112 = vector.shape_cast %111 : vector<16xf32> to vector<16x1xf32>
    %cst_45 = arith.constant 3.200000e+01 : f32
    %113 = vector.broadcast %cst_45 : f32 to vector<16x1xf32>
    %114 = arith.divf %112, %113 : vector<16x1xf32>
    %115 = vector.broadcast %114 : vector<16x1xf32> to vector<16x32xf32>
    %116 = arith.subf %108, %115 : vector<16x32xf32>
    %117 = vector.broadcast %114 : vector<16x1xf32> to vector<16x32xf32>
    %118 = arith.subf %108, %117 : vector<16x32xf32>
    %119 = arith.mulf %116, %118 : vector<16x32xf32>
    %cst_46 = arith.constant dense<0.000000e+00> : vector<16xf32>
    %120 = vector.multi_reduction <add>, %119, %cst_46 [1] : vector<16x32xf32> to vector<16xf32>
    %121 = vector.shape_cast %120 : vector<16xf32> to vector<16x1xf32>
    %cst_47 = arith.constant 3.200000e+01 : f32
    %122 = vector.broadcast %cst_47 : f32 to vector<16x1xf32>
    %123 = arith.divf %121, %122 : vector<16x1xf32>
    %124 = vector.broadcast %114 : vector<16x1xf32> to vector<16x32xf32>
    %125 = arith.subf %108, %124 : vector<16x32xf32>
    %cst_48 = arith.constant 9.99999974E-6 : f32
    %126 = vector.broadcast %cst_48 : f32 to vector<16x1xf32>
    %127 = arith.addf %123, %126 : vector<16x1xf32>
    %128 = math.rsqrt %127 : vector<16x1xf32>
    %129 = vector.broadcast %128 : vector<16x1xf32> to vector<16x32xf32>
    %130 = arith.mulf %125, %129 : vector<16x32xf32>
    %131 = vector.broadcast %109 : vector<1x32xf32> to vector<16x32xf32>
    %132 = arith.mulf %130, %131 : vector<16x32xf32>
    %133 = vector.broadcast %110 : vector<1x32xf32> to vector<16x32xf32>
    %134 = arith.addf %132, %133 : vector<16x32xf32>
    %135 = arith.truncf %134 : vector<16x32xf32> to vector<16x32xbf16>
    %c0_49 = arith.constant 0 : index
    %c0_50 = arith.constant 0 : index
    %136 = vector.load %arg7[%c0_49, %c0_50] : memref<32x64xbf16, #tpu.memory_space<vmem>>, vector<32x64xbf16>
    %cst_51 = arith.constant dense<0.000000e+00> : vector<16x64xf32>
    %137 = tpu.matmul %135, %136, %cst_51 {dimension_numbers = #tpu.dot_dimension_numbers<[1], [0], [0], [1], [0, 0, 1, 1], [], []>} : vector<16x32xbf16>, vector<32x64xbf16>, vector<16x64xf32> -> vector<16x64xf32>
    %c0_52 = arith.constant 0 : index
    %c0_53 = arith.constant 0 : index
    %138 = vector.load %arg8[%c0_52, %c0_53] : memref<1x64xf32, #tpu.memory_space<vmem>>, vector<1x64xf32>
    %139 = vector.broadcast %138 : vector<1x64xf32> to vector<16x64xf32>
    %140 = arith.addf %137, %139 : vector<16x64xf32>
    %cst_54 = arith.constant 0.000000e+00 : f32
    %141 = vector.broadcast %cst_54 : f32 to vector<16x64xf32>
    %142 = arith.maximumf %140, %141 : vector<16x64xf32>
    %143 = arith.truncf %142 : vector<16x64xf32> to vector<16x64xbf16>
    %c0_55 = arith.constant 0 : index
    %c0_56 = arith.constant 0 : index
    %144 = vector.load %arg9[%c0_55, %c0_56] : memref<64x32xbf16, #tpu.memory_space<vmem>>, vector<64x32xbf16>
    %cst_57 = arith.constant dense<0.000000e+00> : vector<16x32xf32>
    %145 = tpu.matmul %143, %144, %cst_57 {dimension_numbers = #tpu.dot_dimension_numbers<[1], [0], [0], [1], [0, 0, 1, 1], [], []>} : vector<16x64xbf16>, vector<64x32xbf16>, vector<16x32xf32> -> vector<16x32xf32>
    %c0_58 = arith.constant 0 : index
    %c0_59 = arith.constant 0 : index
    %146 = vector.load %arg10[%c0_58, %c0_59] : memref<1x32xf32, #tpu.memory_space<vmem>>, vector<1x32xf32>
    %147 = vector.broadcast %146 : vector<1x32xf32> to vector<16x32xf32>
    %148 = arith.addf %145, %147 : vector<16x32xf32>
    %149 = arith.addf %134, %148 : vector<16x32xf32>
    %150 = vector.extract_strided_slice %107 {offsets = [2, 0], sizes = [1, 32], strides = [1, 1]} : vector<4x32xf32> to vector<1x32xf32>
    %151 = vector.extract_strided_slice %107 {offsets = [3, 0], sizes = [1, 32], strides = [1, 1]} : vector<4x32xf32> to vector<1x32xf32>
    %cst_60 = arith.constant dense<0.000000e+00> : vector<16xf32>
    %152 = vector.multi_reduction <add>, %149, %cst_60 [1] : vector<16x32xf32> to vector<16xf32>
    %153 = vector.shape_cast %152 : vector<16xf32> to vector<16x1xf32>
    %cst_61 = arith.constant 3.200000e+01 : f32
    %154 = vector.broadcast %cst_61 : f32 to vector<16x1xf32>
    %155 = arith.divf %153, %154 : vector<16x1xf32>
    %156 = vector.broadcast %155 : vector<16x1xf32> to vector<16x32xf32>
    %157 = arith.subf %149, %156 : vector<16x32xf32>
    %158 = vector.broadcast %155 : vector<16x1xf32> to vector<16x32xf32>
    %159 = arith.subf %149, %158 : vector<16x32xf32>
    %160 = arith.mulf %157, %159 : vector<16x32xf32>
    %cst_62 = arith.constant dense<0.000000e+00> : vector<16xf32>
    %161 = vector.multi_reduction <add>, %160, %cst_62 [1] : vector<16x32xf32> to vector<16xf32>
    %162 = vector.shape_cast %161 : vector<16xf32> to vector<16x1xf32>
    %cst_63 = arith.constant 3.200000e+01 : f32
    %163 = vector.broadcast %cst_63 : f32 to vector<16x1xf32>
    %164 = arith.divf %162, %163 : vector<16x1xf32>
    %165 = vector.broadcast %155 : vector<16x1xf32> to vector<16x32xf32>
    %166 = arith.subf %149, %165 : vector<16x32xf32>
    %cst_64 = arith.constant 9.99999974E-6 : f32
    %167 = vector.broadcast %cst_64 : f32 to vector<16x1xf32>
    %168 = arith.addf %164, %167 : vector<16x1xf32>
    %169 = math.rsqrt %168 : vector<16x1xf32>
    %170 = vector.broadcast %169 : vector<16x1xf32> to vector<16x32xf32>
    %171 = arith.mulf %166, %170 : vector<16x32xf32>
    %172 = vector.broadcast %150 : vector<1x32xf32> to vector<16x32xf32>
    %173 = arith.mulf %171, %172 : vector<16x32xf32>
    %174 = vector.broadcast %151 : vector<1x32xf32> to vector<16x32xf32>
    %175 = arith.addf %173, %174 : vector<16x32xf32>
    %176 = vector.shape_cast %175 : vector<16x32xf32> to vector<2x8x32xf32>
    %177 = tpu.transpose %176, [1, 0, 2] : vector<2x8x32xf32> -> vector<8x2x32xf32>
    %c0_65 = arith.constant 0 : index
    %c0_66 = arith.constant 0 : index
    %c0_67 = arith.constant 0 : index
    %178 = vector.load %arg12[%c0_65, %c0_66, %c0_67] : memref<8x2x32xf32, #tpu.memory_space<vmem>>, vector<8x2x32xf32>
    tpu.vector_store %arg12[%c0_65, %c0_66, %c0_67], %177 {strides = array<i32>} : memref<8x2x32xf32, #tpu.memory_space<vmem>>, vector<8x2x32xf32>,
    return
  }
  func.func @transform_0(%arg0: i32) -> (i32, i32, i32) {
    %c0_i32 = arith.constant 0 : i32
    %c0_i32_0 = arith.constant 0 : i32
    %c0_i32_1 = arith.constant 0 : i32
    return %c0_i32, %arg0, %c0_i32_0 : i32, i32, i32
  }
  func.func @transform_1(%arg0: i32) -> (i32, i32, i32) {
    %c0_i32 = arith.constant 0 : i32
    %c0_i32_0 = arith.constant 0 : i32
    %c0_i32_1 = arith.constant 0 : i32
    return %c0_i32, %arg0, %c0_i32_0 : i32, i32, i32
  }
  func.func @transform_2(%arg0: i32) -> (i32, i32) {
    %c0_i32 = arith.constant 0 : i32
    %c0_i32_0 = arith.constant 0 : i32
    %c0_i32_1 = arith.constant 0 : i32
    return %c0_i32, %c0_i32_0 : i32, i32
  }
  func.func @transform_3(%arg0: i32) -> (i32, i32) {
    %c0_i32 = arith.constant 0 : i32
    %c0_i32_0 = arith.constant 0 : i32
    %c0_i32_1 = arith.constant 0 : i32
    return %c0_i32, %c0_i32_0 : i32, i32
  }
  func.func @transform_4(%arg0: i32) -> (i32, i32) {
    %c0_i32 = arith.constant 0 : i32
    %c0_i32_0 = arith.constant 0 : i32
    %c0_i32_1 = arith.constant 0 : i32
    return %c0_i32, %c0_i32_0 : i32, i32
  }
  func.func @transform_5(%arg0: i32) -> (i32, i32) {
    %c0_i32 = arith.constant 0 : i32
    %c0_i32_0 = arith.constant 0 : i32
    %c0_i32_1 = arith.constant 0 : i32
    return %c0_i32, %c0_i32_0 : i32, i32
  }
  func.func @transform_6(%arg0: i32) -> (i32, i32) {
    %c0_i32 = arith.constant 0 : i32
    %c0_i32_0 = arith.constant 0 : i32
    %c0_i32_1 = arith.constant 0 : i32
    return %c0_i32, %c0_i32_0 : i32, i32
  }
  func.func @transform_7(%arg0: i32) -> (i32, i32) {
    %c0_i32 = arith.constant 0 : i32
    %c0_i32_0 = arith.constant 0 : i32
    %c0_i32_1 = arith.constant 0 : i32
    return %c0_i32, %c0_i32_0 : i32, i32
  }
  func.func @transform_8(%arg0: i32) -> (i32, i32) {
    %c0_i32 = arith.constant 0 : i32
    %c0_i32_0 = arith.constant 0 : i32
    %c0_i32_1 = arith.constant 0 : i32
    return %c0_i32, %c0_i32_0 : i32, i32
  }
  func.func @transform_9(%arg0: i32) -> (i32, i32) {
    %c0_i32 = arith.constant 0 : i32
    %c0_i32_0 = arith.constant 0 : i32
    %c0_i32_1 = arith.constant 0 : i32
    return %c0_i32, %c0_i32_0 : i32, i32
  }
  func.func @transform_10(%arg0: i32) -> (i32, i32) {
    %c0_i32 = arith.constant 0 : i32
    %c0_i32_0 = arith.constant 0 : i32
    %c0_i32_1 = arith.constant 0 : i32
    return %c0_i32, %c0_i32_0 : i32, i32
  }
  func.func @transform_11(%arg0: i32) -> (i32, i32, i32) {
    %c0_i32 = arith.constant 0 : i32
    %c0_i32_0 = arith.constant 0 : i32
    %c0_i32_1 = arith.constant 0 : i32
    return %c0_i32, %arg0, %c0_i32_0 : i32, i32, i32
  }
}

</mosaic_0001>

<bundles_post_ra>
// kernel: tpu_custom_call.1
= control target key start
LH: loop header
LB: loop body
LE: loop exit
PB: predicated region body
PF: predicated region fallthrough
CT: control target
= control target key end

     0   :  { %16 = vsyncpa [#allocation4], 0  ;;  %s3430_s0 = inlined_call_operand.hbm [shape: bf16[8,2,32], index: 0, kind: input, shape index: {}]   ;;  %s3431_s1 = inlined_call_operand.hbm [shape: bf16[8,2,32], index: 1, kind: input, shape index: {}]   ;;  %s3432_s2 = inlined_call_operand.vmem [shape: bf16[64,192], index: 2, kind: input, shape index: {}]   ;;  %s3433_s3 = inlined_call_operand.hbm [shape: f32[1,192], index: 3, kind: input, shape index: {}]   ;;  %s3434_s4 = inlined_call_operand.vmem [shape: bf16[64,32], index: 4, kind: input, shape index: {}]   ;;  %s3435_s5 = inlined_call_operand.vmem [shape: f32[1,32], index: 5, kind: input, shape index: {}]   ;;  %s3436_s6 = inlined_call_operand.vmem [shape: bf16[32,64], index: 6, kind: input, shape index: {}]   ;;  %s3437_s7 = inlined_call_operand.vmem [shape: f32[1,64], index: 7, kind: input, shape index: {}]   ;;  %s3438_s8 = inlined_call_operand.vmem [shape: bf16[64,32], index: 8, kind: input, shape index: {}]   ;;  %s3439_s9 = inlined_call_operand.vmem [shape: f32[1,32], index: 9, kind: input, shape index: {}]   ;;  %s3440_s10 = inlined_call_operand.vmem [shape: f32[4,32], index: 10, kind: input, shape index: {}]   ;;  %s3441_s11 = inlined_call_operand.hbm [shape: f32[8,2,32], index: 11, kind: output, shape index: {}]  }
   0x1   :  { %17 = vsyncpa [#allocation7], 0 }
   0x2   :  { %18 = vsyncpa [#allocation5], 0  ;;  %s2865_s17 = smov [#allocation6]   ;;  %s2866_s19 = smov [#allocation3]  }
   0x3   :  { %s36_s18 = sshll.u32 %s2865_s17, 4  ;;  %s24_s20 = sshll.u32 %s2866_s19, 4  ;;  %s37_s18 = int_to_ptr.vmem [resolvable:$true] %s36_s18  ;;  %s25_s20 = int_to_ptr.vmem [resolvable:$true] %s24_s20 }
   0x4   :  { %s2787_s21 = scalar_lea.vmem %s37_s18, 128  ;;  %p2792_p1 = scmp.lt.s32.totalorder %s37_s18, %s37_s18 }
   0x5   :  { %p2788_p0 = scmp.ne.s32.totalorder %s37_s18, %s2787_s21  ;;  %p2793_p2 = scmp.lt.s32.totalorder %s2787_s21, %s2787_s21 }
   0x7   :  { %p2794_p3 = por %p2793_p2, %p2792_p1 }
   0x9   :  { %p2795_p4 = pnand %p2794_p3, %p2788_p0 }
   0xb   :  { %2798 = shalt.err (!%p2795_p4)
}
   0xc   :  { %s2867_s22 = smov 16   ;;  %s2868_s23 = smov 1  }
   0xd   :  { %42 = dma.hbm_to_vmem [thread:$0]  %s3431_s1, 128, %s37_s18, [#allocation7], %s2867_s22, %s2867_s22, %s2868_s23  }
   0xe   :  { %s2807_s26 = scalar_lea.vmem %s25_s20, 128  ;;  %p2812_p6 = scmp.lt.s32.totalorder %s25_s20, %s25_s20 }
   0xf   :  { %p2808_p5 = scmp.ne.s32.totalorder %s25_s20, %s2807_s26  ;;  %p2813_p7 = scmp.lt.s32.totalorder %s2807_s26, %s2807_s26 }
  0x11   :  { %p2814_p8 = por %p2813_p7, %p2812_p6 }
  0x13   :  { %p2815_p9 = pnand %p2814_p8, %p2808_p5 }
  0x15   :  { %2818 = shalt.err (!%p2815_p9)
}
  0x16   :  { %30 = dma.hbm_to_vmem [thread:$0]  %s3430_s0, 128, %s25_s20, [#allocation4], %s2867_s22, %s2867_s22, %s2868_s23  }
  0x17   :  { %s2869_s29 = smov [#allocation8]  }
  0x18   :  { %s51_s30 = sshll.u32 %s2869_s29, 4  ;;  %s52_s30 = int_to_ptr.vmem [resolvable:$true] %s51_s30 }
  0x19   :  { %s2827_s12 = scalar_lea.vmem %s52_s30, 32  ;;  %p2832_p11 = scmp.lt.s32.totalorder %s52_s30, %s52_s30 }
  0x1a   :  { %p2828_p10 = scmp.ne.s32.totalorder %s52_s30, %s2827_s12  ;;  %p2833_p12 = scmp.lt.s32.totalorder %s2827_s12, %s2827_s12 }
  0x1c   :  { %p2834_p13 = por %p2833_p12, %p2832_p11 }
  0x1e   :  { %p2835_p0 = pnand %p2834_p13, %p2828_p10 }
  0x20   :  { %2838 = shalt.err (!%p2835_p0)
}
  0x21   :  { %54 = dma.hbm_to_vmem [thread:$0]  %s3433_s3, 32, %s52_s30, [#allocation7]  }
  0x22   :  { %2859 = dma.done.wait [#allocation4], 128  }
  0x23   :  { %2860 = vsyncadd [#allocation4], 4294967168 }
  0x24   :  { %2861 = dma.done.wait [#allocation7], 160  }
  0x25   :  { %2862 = vsyncadd [#allocation7], 4294967136  ;;  %v99_v0 = vlaneseq  ;;  %v2870_v1 = vmov 1934713408   ;;  %v2871_v5 = vmov 1983009808  }
  0x26   :  { %v97_v2 = vunpack.c.l.s4 %v2870_v1  ;;  %v194_v6 = vunpack.c.l.s4 %v2871_v5  ;;  %v131_v7 = vld [vmem:[#allocation6] sm:$0x1]  ;;  %v132_v8 = vld [vmem:[#allocation6 + $0x1] sm:$0x1]  ;;  %v133_v9 = vld [vmem:[#allocation6 + $0x2] sm:$0x1] }
  0x27   :  { %v2960_v4 = vshrl.u32 %v99_v0, 7  ;;  %v134_v11 = vld [vmem:[#allocation6 + $0x3] sm:$0x1]  ;;  %v135_v12 = vld [vmem:[#allocation6 + $0x4] sm:$0x1]  ;;  %v139_v14 = vunpack.c.l.bf16 %v131_v7  ;;  %v140_v15 = vunpack.c.l.bf16 %v132_v8  ;;  %v141_v16 = vunpack.c.l.bf16 %v133_v9  ;;  %s2873_s29 = smov 32  }
  0x28   :  { %v98_v3 = vunpack.c.0.s8 %v97_v2  ;;  %v136_v13 = vld [vmem:[#allocation6 + $0x5] sm:$0x1]  ;;  %v137_v17 = vld [vmem:[#allocation6 + $0x6] sm:$0x1]  ;;  %v138_v18 = vld [vmem:[#allocation6 + $0x7] sm:$0x1]  ;;  %v142_v19 = vunpack.c.l.bf16 %v134_v11  ;;  %v143_v20 = vunpack.c.l.bf16 %v135_v12  ;;  %v195_v22 = vunpack.c.0.s8 %v194_v6 }
  0x29   :  { %v144_v21 = vunpack.c.l.bf16 %v136_v13  ;;  %v145_v23 = vunpack.c.l.bf16 %v137_v17  ;;  %v146_v24 = vunpack.c.l.bf16 %v138_v18  ;;  %v147_v25 = vcombine.low %v139_v14, %v140_v15  ;;  %v2716_v26 = vld [vmem:[%s3432_s2 + $0x34] ss:$8 sps:$4 sm:$0xff]   ;;  %v2718_v27 = vld [vmem:[%s3432_s2 + $0x30] ss:$8 sps:$4 sm:$0xff]   ;;  %v2719_v30 = vld [vmem:[%s3432_s2 + $0x24] ss:$8 sps:$4 sm:$0xff]  }
  0x2a   :  { %v2963_v10 = vsub.s32 %v98_v3, %v2960_v4  ;;  %v156_v28 = vcombine.low %v141_v16, %v142_v19  ;;  %351 = vmatprep.subr.bf16.mxu0 %v2716_v26  ;;  %v2978_v35 = vsub.s32 %v195_v22, %v2960_v4  ;;  %v2721_v36 = vld [vmem:[%s3432_s2 + $0x20] ss:$8 sps:$4 sm:$0xff]   ;;  %v2722_v38 = vld [vmem:[%s3432_s2 + $0x14] ss:$8 sps:$4 sm:$0xff]   ;;  %v2724_v45 = vld [vmem:[%s3432_s2 + $0x10] ss:$8 sps:$4 sm:$0xff]  }
  0x2b   :  { %v165_v29 = vcombine.low %v143_v20, %v144_v21  ;;  %v174_v32 = vcombine.low %v145_v23, %v146_v24  ;;  %352 = vmatpush1.bf16.msra.mxu0 %v2718_v27  ;;  %v2725_v46 = vld [vmem:[%s3432_s2 + $0x4] ss:$8 sps:$4 sm:$0xff]   ;;  %v2872_v51 = vmov 0   ;;  %v2727_v52 = vld [vmem:[%s3432_s2] ss:$8 sps:$4 sm:$0xff]   ;;  %vm275_vm0 = vcmask 261120  }
  0x2c   :  { %v154_v31 = vrot.slane %v147_v25, %v2963_v10  ;;  %v163_v33 = vrot.slane %v156_v28, %v2963_v10  ;;  %353 = vmatprep.subr.bf16.mxu0 %v2719_v30  ;;  %375 = vmatprep.mubr.bf16.mxu0 %v2872_v51  ;;  %v79_v54 = vld [vmem:[#allocation3] sm:$0x1]  ;;  %v80_v55 = vld [vmem:[#allocation3 + $0x1] sm:$0x1]  ;;  %v81_v56 = vld [vmem:[#allocation3 + $0x2] sm:$0x1] }
  0x2d   :  { %v172_v34 = vrot.slane %v165_v29, %v2963_v10  ;;  %v181_v37 = vrot.slane %v174_v32, %v2963_v10  ;;  %v82_v57 = vld [vmem:[#allocation3 + $0x3] sm:$0x1]  ;;  %v83_v58 = vld [vmem:[#allocation3 + $0x4] sm:$0x1]  ;;  %v84_v59 = vld [vmem:[#allocation3 + $0x5] sm:$0x1]  ;;  %v87_v62 = vunpack.c.l.bf16 %v79_v54  ;;  %v88_v63 = vunpack.c.l.bf16 %v80_v55 }
  0x2e   :  { %v235_v39 = vcombine.low %v154_v31, %v163_v33  ;;  %v2452_v40 = vcombine.high %v154_v31, %v163_v33  ;;  %v85_v60 = vld [vmem:[#allocation3 + $0x6] sm:$0x1]  ;;  %v86_v61 = vld [vmem:[#allocation3 + $0x7] sm:$0x1]  ;;  %v89_v0 = vunpack.c.l.bf16 %v81_v56  ;;  %v90_v1 = vunpack.c.l.bf16 %v82_v57  ;;  %s2876_s2 = smov 64   ;;  %s2877_s30 = smov 48  }
  0x2f   :  { %v236_v41 = vcombine.low %v172_v34, %v181_v37  ;;  %v2453_v42 = vcombine.high %v172_v34, %v181_v37  ;;  %354 = vmatpush1.bf16.msra.mxu0 %v2721_v36  ;;  %v91_v2 = vunpack.c.l.bf16 %v83_v58  ;;  %v92_v3 = vunpack.c.l.bf16 %v84_v59  ;;  %v287_v34 = vld [vmem:[#allocation8] sm:$0x3]  ;;  %s2878_s12 = smov 112   ;;  %s2879_s1 = smov 96  }
  0x30   :  { %v243_v43 = vrot.slane %v235_v39, %v2978_v35  ;;  %v260_v44 = vrot.slane %v2452_v40, %v2978_v35  ;;  %355 = vmatprep.subr.bf16.mxu0 %v2722_v38  ;;  %v93_v5 = vunpack.c.l.bf16 %v85_v60  ;;  %v94_v6 = vunpack.c.l.bf16 %v86_v61  ;;  %s2880_s13 = smov 80  }
  0x31   :  { %v250_v47 = vrot.slane %v236_v41, %v2978_v35  ;;  %v267_v48 = vrot.slane %v2453_v42, %v2978_v35  ;;  %v95_v7 = vcombine.low %v87_v62, %v88_v63  ;;  %v104_v8 = vcombine.low %v89_v0, %v90_v1 }
  0x32   :  { %v113_v9 = vcombine.low %v91_v2, %v92_v3  ;;  %v122_v11 = vcombine.low %v93_v5, %v94_v6  ;;  %vm339_vm1 = vcmask 523264   ;;  %v2874_v32 = vmov 0.0  }
  0x33   :  { %v251_v49 = vcombine.low %v243_v43, %v250_v47  ;;  %v268_v50 = vcombine.low %v260_v44, %v267_v48  ;;  %356 = vmatpush1.bf16.msra.mxu0 %v2724_v45  ;;  %v3002_v12 = vrot.slane %v95_v7, %v2963_v10  ;;  %v3005_v13 = vrot.slane %v104_v8, %v2963_v10 }
  0x34   :  { %357 = vmatprep.subr.bf16.mxu0 %v2725_v46  ;;  %v3008_v14 = vrot.slane %v113_v9, %v2963_v10  ;;  %v3011_v15 = vrot.slane %v122_v11, %v2963_v10  ;;  %2561 = vmatprep.subr.bf16.mxu1 %v2874_v32  ;;  %v291_v33 = vsub.s32 0, %v2960_v4  ;;  %v295_v36 = vsub.s32 1, %v2960_v4 }
  0x35   :  { %v2711_v53 = vpack.i.bf16 %v268_v50, %v251_v49  ;;  %v191_v16 = vcombine.low %v3002_v12, %v3005_v13  ;;  %v2450_v18 = vcombine.high %v3002_v12, %v3005_v13  ;;  %vm2875_vm2 = vmmov 0  }
  0x36   :  { %v192_v17 = vcombine.low %v3008_v14, %v3011_v15  ;;  %v2451_v19 = vcombine.high %v3008_v14, %v3011_v15  ;;  %v292_v37 = vrot.slane %v287_v34, %v291_v33  ;;  %2563 = vmatprep.mubr.msk.bf16.mxu1 %vm2875_vm2, %v2874_v32  ;;  %v296_v38 = vrot.slane %v287_v34, %v295_v36 }
  0x37   :  { %2712 = vrot.lane.b32.xlu0 %v2711_v53, %s2873_s29  ;;  %358 = vmatpush1.bf16.msra.mxu0 %v2727_v52  ;;  %v199_v20 = vrot.slane %v191_v16, %v2978_v35  ;;  %v216_v22 = vrot.slane %v2450_v18, %v2978_v35  ;;  %vm523_vm3 = vcmask 1043456   ;;  %vm400_vm4 = vcmask 130048  }
  0x38   :  { %v206_v21 = vrot.slane %v192_v17, %v2978_v35  ;;  %v223_v23 = vrot.slane %v2451_v19, %v2978_v35  ;;  %2573 = vmatprep.subr.bf16.mxu0 %v2874_v32  ;;  %vm495_vm5 = vcmask 64512   ;;  %vm615_vm6 = vcmask 125952  }
  0x39   :  { %vm852_vm7 = vcmask 257152   ;;  %vm1089_vm8 = vcmask 388352   ;;  %vm1326_vm9 = vcmask 519552   ;;  %vm2423_vm10 = vcmask 254976  }
  0x3a   :  { %v207_v24 = vcombine.low %v199_v20, %v206_v21  ;;  %v224_v25 = vcombine.low %v216_v22, %v223_v23 }
  0xa9   :  { %v2713_v26 = vpop.permute.xlu0 %2712 }
  0xaa   :  { %v2715_v27 = vunpack.i.h.bf16 %v2713_v26  ;;  %v2714_v28 = vunpack.i.l.bf16 %v2713_v26 }
  0xac   :  { %v276_v29 = vsel %vm275_vm0, %v207_v24, %v2714_v28  ;;  %v277_v30 = vsel %vm275_vm0, %v224_v25, %v2715_v27 }
  0xad   :  { %v278_v31 = vpack.c.bf16 %v277_v30, %v276_v29 }
  0xaf   :  { %2462 = vmatmul.mubr.msk.bf16.vlgmr.msra.gmra.mxu0 %vm339_vm1, %v278_v31 }
  0xb0   :  { %2575 = vmatprep.mubr.msk.bf16.mxu0 %vm2875_vm2, %v2874_v32 }
 0x16f   :  { %v377_v39 = vpop.f32.mrf.mxu0 }
 0x170   :  { %v378_v40 = vadd.f32 %v377_v39, %v292_v37 }
 0x171   :  { %v379_v41 = vpop.f32.mrf.mxu0 }
 0x172   :  { %v3040_v42 = vpack.c.bf16 %v378_v40, %v378_v40  ;;  %v380_v43 = vadd.f32 %v379_v41, %v296_v38 }
 0x173   :  { %v381_v44 = vpop.f32.mrf.mxu0 }
 0x174   :  { %v3042_v45 = vpack.c.bf16 %v380_v43, %v380_v43  ;;  %v382_v46 = vadd.f32 %v381_v44, %v292_v37  ;;  %398 = vrot.lane.b32.xlu0 %v3040_v42, %s2876_s2 }
 0x175   :  { %v383_v51 = vpop.f32.mrf.mxu0 }
 0x176   :  { %v3045_v47 = vpack.c.bf16 %v382_v46, %v382_v46  ;;  %v525_v48 = vsel %vm523_vm3, %v3042_v45, 0  ;;  %v384_v53 = vadd.f32 %v383_v51, %v296_v38 }
 0x177   :  { %2574 = vmatpush3.bf16.msra.mxu0 %v525_v48 }
 0x178   :  { %447 = vrot.lane.b32.xlu1 %v3045_v47, %s2876_s2  ;;  %2585 = vmatprep.subr.bf16.mxu0 %v2874_v32  ;;  %v3059_v55 = vpack.c.bf16 %v384_v53, %v384_v53 }
 0x17a   :  { %v571_v56 = vsel %vm523_vm3, %v3059_v55, 0 }
 0x1e6   :  { %v399_v49 = vpop.permute.xlu0 %398 }
 0x1e7   :  { %v405_v50 = vsel %vm400_vm4, %v399_v49, 0 }
 0x1e8   :  { %2562 = vmatpush3.bf16.xpose.msra.mxu1 %v405_v50 }
 0x1e9   :  { %2567 = vmatprep.subr.bf16.mxu1 %v2874_v32 }
 0x1ea   :  { %v448_v52 = vpop.permute.xlu1 %447 }
 0x1eb   :  { %v453_v54 = vsel %vm400_vm4, %v448_v52, 0 }
 0x1ef   :  { %2564 = vmatmul.mubr.msk.bf16.vlgmr.msra.gmra.mxu1 %vm400_vm4, %v3040_v42 }
 0x1f0   :  { %2568 = vmatpush3.bf16.xpose.msra.mxu1 %v453_v54  ;;  %2569 = vmatprep.mubr.msk.bf16.mxu1 %vm2875_vm2, %v2874_v32 }
 0x1f1   :  { %2579 = vmatprep.subr.bf16.mxu1 %v2874_v32 }
 0x1f7   :  { %2570 = vmatmul.mubr.msk.bf16.vlgmr.msra.gmra.mxu1 %vm400_vm4, %v3045_v47 }
 0x1f8   :  { %2580 = vmatpush3.bf16.msra.mxu1 %v571_v56  ;;  %2581 = vmatprep.mubr.msk.bf16.mxu1 %vm2875_vm2, %v2874_v32 }
 0x1f9   :  { %2591 = vmatprep.subr.bf16.mxu1 %v2874_v32 }
 0x2af   :  { %v441_v57 = vpop.f32.mrf.mxu1 }
 0x2b0   :  { %v496_v58 = vsel %vm495_vm5, %v441_v57, -inf }
 0x2b1   :  { %497 = vmax.xlane.f32.xlu1 %v496_v58  ;;  %v2565_v59 = vpop.f32.mrf.mxu1 }
 0x2b3   :  { %v444_v60 = vpop.f32.mrf.mxu1 }
 0x2b5   :  { %v2566_v61 = vpop.f32.mrf.mxu1 }
 0x2b7   :  { %v489_v62 = vpop.f32.mrf.mxu1 }
 0x2b8   :  { %v499_v63 = vsel %vm495_vm5, %v489_v62, -inf }
 0x2b9   :  { %500 = vmax.xlane.f32.xlu0 %v499_v63  ;;  %v2571_v0 = vpop.f32.mrf.mxu1 }
 0x2bb   :  { %v492_v1 = vpop.f32.mrf.mxu1 }
 0x2bd   :  { %v2572_v2 = vpop.f32.mrf.mxu1 }
 0x33a   :  { %v498_v3 = vpop.xlane.xlu1 %497 }
 0x33b   :  { %v502_v5 = vsub.f32 %v441_v57, %v498_v3 }
 0x33d   :  { %v504_v6 = vmul.f32 1.442695, %v502_v5 }
 0x33f   :  { %2739 = vpow2.f32 %v504_v6 }
 0x342   :  { %v501_v7 = vpop.xlane.xlu0 %500 }
 0x343   :  { %v503_v8 = vsub.f32 %v489_v62, %v501_v7 }
 0x345   :  { %v506_v9 = vmul.f32 1.442695, %v503_v8 }
 0x347   :  { %2741 = vpow2.f32 %v506_v9 }
 0x34c   :  { %v2740_v11 = vpop.eup %2739 }
 0x34d   :  { %v508_v16 = vsel %vm495_vm5, %v2740_v11, 0.0 }
 0x34e   :  { %509 = vadd.xlane.f32.xlu0 %v508_v16 }
 0x354   :  { %v2742_v17 = vpop.eup %2741 }
 0x355   :  { %v511_v18 = vsel %vm495_vm5, %v2742_v17, 0.0 }
 0x356   :  { %512 = vadd.xlane.f32.xlu1 %v511_v18 }
 0x364   :  { %620 = vrot.lane.b32.xlu0 %v3040_v42, %s2877_s30 }
 0x367   :  { %670 = vrot.lane.b32.xlu1 %v3045_v47, %s2877_s30 }
 0x368   :  { %668 = vrot.lane.b32.xlu0 %v3045_v47, %s2878_s12 }
 0x36b   :  { %618 = vrot.lane.b32.xlu1 %v3040_v42, %s2878_s12 }
 0x3d7   :  { %v510_v19 = vpop.xlane.xlu0 %509 }
 0x3d8   :  { %2743 = vrcp.f32 %v510_v19 }
 0x3db   :  { %v621_v23 = vpop.permute.xlu0 %620 }
 0x3dc   :  { %v626_v25 = vsel %vm400_vm4, %v621_v23, 0 }
 0x3df   :  { %v513_v20 = vpop.xlane.xlu1 %512  ;;  %v669_v34 = vpop.permute.xlu0 %668 }
 0x3e0   :  { %2745 = vrcp.f32 %v513_v20 }
 0x3e3   :  { %v671_v26 = vpop.permute.xlu1 %670 }
 0x3e4   :  { %v676_v31 = vsel %vm400_vm4, %v671_v26, 0 }
 0x3e5   :  { %v2744_v21 = vpop.eup %2743 }
 0x3e6   :  { %v516_v22 = vmul.f32 %v2744_v21, %v2740_v11 }
 0x3e7   :  { %v619_v30 = vpop.permute.xlu1 %618 }
 0x3e8   :  { %v518_v24 = vpack.c.bf16 %v516_v22, %v516_v22 }
 0x3ea   :  { %2576 = vmatmul.mubr.msk.bf16.vlgmr.msra.gmra.mxu0 %vm495_vm5, %v518_v24 }
 0x3eb   :  { %2586 = vmatpush3.bf16.xpose.msra.mxu0 %v626_v25  ;;  %2587 = vmatprep.mubr.msk.bf16.mxu0 %vm2875_vm2, %v2874_v32 }
 0x3ec   :  { %2597 = vmatprep.subr.bf16.mxu0 %v2874_v32 }
 0x3ed   :  { %v2746_v27 = vpop.eup %2745 }
 0x3ee   :  { %v517_v28 = vmul.f32 %v2746_v27, %v2742_v17 }
 0x3f0   :  { %v519_v29 = vpack.c.bf16 %v517_v28, %v517_v28 }
 0x3f2   :  { %2582 = vmatmul.mubr.msk.bf16.vlgmr.msra.gmra.mxu1 %vm495_vm5, %v519_v29  ;;  %2588 = vmatmul.mubr.msk.bf16.vlgmr.msra.gmra.mxu0 %vm400_vm4, %v619_v30 }
 0x3f3   :  { %2592 = vmatpush3.bf16.xpose.msra.mxu1 %v676_v31  ;;  %2593 = vmatprep.mubr.msk.bf16.mxu1 %vm2875_vm2, %v2874_v32 }
 0x3f4   :  { %2603 = vmatprep.subr.bf16.mxu1 %v2874_v32  ;;  %2599 = vmatprep.mubr.msk.bf16.mxu0 %vm2875_vm2, %v2874_v32 }
 0x3fa   :  { %2594 = vmatmul.mubr.msk.bf16.vlgmr.msra.gmra.mxu1 %vm400_vm4, %v669_v34 }
 0x3fb   :  { %2605 = vmatprep.mubr.msk.bf16.mxu1 %vm2875_vm2, %v2874_v32 }
 0x4aa   :  { %v561_v37 = vpop.f32.mrf.mxu0 }
 0x4ab   :  { %v613_v38 = vpack.c.bf16 %v561_v37, %v561_v37 }
 0x4ac   :  { %v2577_v39 = vpop.f32.mrf.mxu0 }
 0x4ad   :  { %616 = vst.msk [vmem:[#allocation2] sm:$0xf] %vm615_vm6, %v613_v38 }
 0x4ae   :  { %v564_v40 = vpop.f32.mrf.mxu0 }
 0x4b0   :  { %v2578_v41 = vpop.f32.mrf.mxu0 }
 0x4b2   :  { %v607_v43 = vpop.f32.mrf.mxu1  ;;  %v662_v44 = vpop.f32.mrf.mxu0 }
 0x4b3   :  { %v614_v46 = vpack.c.bf16 %v607_v43, %v607_v43  ;;  %v718_v48 = vsel %vm495_vm5, %v662_v44, -inf }
 0x4b4   :  { %719 = vmax.xlane.f32.xlu1 %v718_v48  ;;  %v2583_v49 = vpop.f32.mrf.mxu1  ;;  %v2589_v50 = vpop.f32.mrf.mxu0 }
 0x4b5   :  { %617 = vst.msk [vmem:[#allocation2 + $0x4] sm:$0xf] %vm615_vm6, %v614_v46 }
 0x4b6   :  { %v610_v51 = vpop.f32.mrf.mxu1  ;;  %v665_v52 = vpop.f32.mrf.mxu0 }
 0x4b8   :  { %v2584_v53 = vpop.f32.mrf.mxu1  ;;  %v2590_v54 = vpop.f32.mrf.mxu0 }
 0x4ba   :  { %v712_v56 = vpop.f32.mrf.mxu1 }
 0x4bb   :  { %v721_v57 = vsel %vm495_vm5, %v712_v56, -inf }
 0x4bc   :  { %722 = vmax.xlane.f32.xlu0 %v721_v57  ;;  %v2595_v58 = vpop.f32.mrf.mxu1 }
 0x4be   :  { %v715_v59 = vpop.f32.mrf.mxu1 }
 0x4c0   :  { %v2596_v60 = vpop.f32.mrf.mxu1 }
 0x4c5   :  { %790 = vrot.lane.b32.xlu1 %v3059_v55, %s2878_s12 }
 0x4d2   :  { %742 = vrot.lane.b32.xlu0 %v3042_v45, %s2878_s12 }
 0x53d   :  { %v720_v61 = vpop.xlane.xlu1 %719 }
 0x53e   :  { %v724_v62 = vsub.f32 %v662_v44, %v720_v61 }
 0x540   :  { %v726_v63 = vmul.f32 1.442695, %v724_v62 }
 0x541   :  { %v791_v0 = vpop.permute.xlu1 %790 }
 0x542   :  { %2747 = vpow2.f32 %v726_v63  ;;  %v796_v1 = vsel %vm523_vm3, %v791_v0, 0 }
 0x543   :  { %2604 = vmatpush3.bf16.msra.mxu1 %v796_v1 }
 0x544   :  { %2615 = vmatprep.subr.bf16.mxu1 %v2874_v32 }
 0x545   :  { %v723_v2 = vpop.xlane.xlu0 %722 }
 0x546   :  { %v725_v3 = vsub.f32 %v712_v56, %v723_v2 }
 0x548   :  { %v728_v5 = vmul.f32 1.442695, %v725_v3 }
 0x549   :  { %v743_v6 = vpop.permute.xlu0 %742 }
 0x54a   :  { %2749 = vpow2.f32 %v728_v5  ;;  %v748_v7 = vsel %vm523_vm3, %v743_v6, 0 }
 0x54b   :  { %2598 = vmatpush3.bf16.msra.mxu0 %v748_v7 }
 0x54c   :  { %2609 = vmatprep.subr.bf16.mxu0 %v2874_v32 }
 0x54f   :  { %v2748_v8 = vpop.eup %2747 }
 0x550   :  { %v730_v9 = vsel %vm495_vm5, %v2748_v8, 0.0 }
 0x551   :  { %731 = vadd.xlane.f32.xlu0 %v730_v9 }
 0x557   :  { %v2750_v11 = vpop.eup %2749 }
 0x558   :  { %v733_v16 = vsel %vm495_vm5, %v2750_v11, 0.0 }
 0x559   :  { %734 = vadd.xlane.f32.xlu1 %v733_v16 }
 0x567   :  { %907 = vrot.lane.b32.xlu0 %v3045_v47, %s2873_s29 }
 0x56a   :  { %857 = vrot.lane.b32.xlu1 %v3040_v42, %s2873_s29 }
 0x56b   :  { %905 = vrot.lane.b32.xlu0 %v3045_v47, %s2879_s1 }
 0x56e   :  { %855 = vrot.lane.b32.xlu1 %v3040_v42, %s2879_s1 }
 0x5da   :  { %v732_v17 = vpop.xlane.xlu0 %731 }
 0x5db   :  { %2751 = vrcp.f32 %v732_v17 }
 0x5de   :  { %v908_v26 = vpop.permute.xlu0 %907 }
 0x5df   :  { %v913_v29 = vsel %vm400_vm4, %v908_v26, 0 }
 0x5e2   :  { %v735_v18 = vpop.xlane.xlu1 %734  ;;  %v906_v30 = vpop.permute.xlu0 %905 }
 0x5e3   :  { %2753 = vrcp.f32 %v735_v18 }
 0x5e6   :  { %v858_v21 = vpop.permute.xlu1 %857 }
 0x5e7   :  { %v863_v23 = vsel %vm400_vm4, %v858_v21, 0 }
 0x5e8   :  { %v2752_v19 = vpop.eup %2751 }
 0x5e9   :  { %v738_v20 = vmul.f32 %v2752_v19, %v2748_v8 }
 0x5ea   :  { %v856_v28 = vpop.permute.xlu1 %855 }
 0x5eb   :  { %v740_v22 = vpack.c.bf16 %v738_v20, %v738_v20 }
 0x5ed   :  { %2600 = vmatmul.mubr.msk.bf16.vlgmr.msra.gmra.mxu0 %vm495_vm5, %v740_v22 }
 0x5ee   :  { %2610 = vmatpush3.bf16.xpose.msra.mxu0 %v863_v23  ;;  %2611 = vmatprep.mubr.msk.bf16.mxu0 %vm2875_vm2, %v2874_v32 }
 0x5ef   :  { %2621 = vmatprep.subr.bf16.mxu0 %v2874_v32 }
 0x5f0   :  { %v2754_v24 = vpop.eup %2753 }
 0x5f1   :  { %v739_v25 = vmul.f32 %v2754_v24, %v2750_v11 }
 0x5f3   :  { %v741_v27 = vpack.c.bf16 %v739_v25, %v739_v25 }
 0x5f5   :  { %2606 = vmatmul.mubr.msk.bf16.vlgmr.msra.gmra.mxu1 %vm495_vm5, %v741_v27  ;;  %2612 = vmatmul.mubr.msk.bf16.vlgmr.msra.gmra.mxu0 %vm400_vm4, %v856_v28 }
 0x5f6   :  { %2616 = vmatpush3.bf16.xpose.msra.mxu1 %v913_v29  ;;  %2617 = vmatprep.mubr.msk.bf16.mxu1 %vm2875_vm2, %v2874_v32 }
 0x5f7   :  { %2627 = vmatprep.subr.bf16.mxu1 %v2874_v32  ;;  %2623 = vmatprep.mubr.msk.bf16.mxu0 %vm2875_vm2, %v2874_v32 }
 0x5fd   :  { %2618 = vmatmul.mubr.msk.bf16.vlgmr.msra.gmra.mxu1 %vm400_vm4, %v906_v30 }
 0x5fe   :  { %2629 = vmatprep.mubr.msk.bf16.mxu1 %vm2875_vm2, %v2874_v32 }
 0x6ad   :  { %v3132_v31 = vpop.f32.mrf.mxu0 }
 0x6af   :  { %v2601_v34 = vpop.f32.mrf.mxu0 }
 0x6b1   :  { %v787_v37 = vpop.f32.mrf.mxu0 }
 0x6b3   :  { %v2602_v38 = vpop.f32.mrf.mxu0 }
 0x6b5   :  { %v3134_v39 = vpop.f32.mrf.mxu1  ;;  %v899_v40 = vpop.f32.mrf.mxu0 }
 0x6b6   :  { %v955_v41 = vsel %vm495_vm5, %v899_v40, -inf }
 0x6b7   :  { %956 = vmax.xlane.f32.xlu1 %v955_v41  ;;  %v2607_v43 = vpop.f32.mrf.mxu1  ;;  %v2613_v44 = vpop.f32.mrf.mxu0 }
 0x6b9   :  { %v835_v46 = vpop.f32.mrf.mxu1  ;;  %v902_v48 = vpop.f32.mrf.mxu0 }
 0x6bb   :  { %v2608_v49 = vpop.f32.mrf.mxu1  ;;  %v2614_v50 = vpop.f32.mrf.mxu0 }
 0x6bd   :  { %v949_v51 = vpop.f32.mrf.mxu1 }
 0x6be   :  { %v958_v52 = vsel %vm495_vm5, %v949_v51, -inf }
 0x6bf   :  { %959 = vmax.xlane.f32.xlu0 %v958_v52  ;;  %v2619_v53 = vpop.f32.mrf.mxu1 }
 0x6c1   :  { %v952_v54 = vpop.f32.mrf.mxu1 }
 0x6c3   :  { %v2620_v56 = vpop.f32.mrf.mxu1 }
 0x6c8   :  { %1027 = vrot.lane.b32.xlu1 %v3059_v55, %s2879_s1 }
 0x6d5   :  { %979 = vrot.lane.b32.xlu0 %v3042_v45, %s2879_s1 }
 0x740   :  { %v957_v57 = vpop.xlane.xlu1 %956 }
 0x741   :  { %v961_v58 = vsub.f32 %v899_v40, %v957_v57 }
 0x743   :  { %v963_v59 = vmul.f32 1.442695, %v961_v58 }
 0x744   :  { %v1028_v60 = vpop.permute.xlu1 %1027 }
 0x745   :  { %2755 = vpow2.f32 %v963_v59  ;;  %v1033_v61 = vsel %vm523_vm3, %v1028_v60, 0 }
 0x746   :  { %2628 = vmatpush3.bf16.msra.mxu1 %v1033_v61 }
 0x747   :  { %2639 = vmatprep.subr.bf16.mxu1 %v2874_v32 }
 0x748   :  { %v960_v62 = vpop.xlane.xlu0 %959 }
 0x749   :  { %v962_v63 = vsub.f32 %v949_v51, %v960_v62 }
 0x74b   :  { %v965_v0 = vmul.f32 1.442695, %v962_v63  ;;  %v2511_v63 = vpack.c.bf16 %v3134_v39, %v3134_v39 }
 0x74c   :  { %v980_v1 = vpop.permute.xlu0 %979 }
 0x74d   :  { %2757 = vpow2.f32 %v965_v0  ;;  %v985_v2 = vsel %vm523_vm3, %v980_v1, 0  ;;  %v2510_v0 = vpack.c.bf16 %v3132_v31, %v3132_v31 }
 0x74e   :  { %2622 = vmatpush3.bf16.msra.mxu0 %v985_v2 }
 0x74f   :  { %2633 = vmatprep.subr.bf16.mxu0 %v2874_v32 }
 0x752   :  { %v2756_v3 = vpop.eup %2755 }
 0x753   :  { %v967_v5 = vsel %vm495_vm5, %v2756_v3, 0.0 }
 0x754   :  { %968 = vadd.xlane.f32.xlu0 %v967_v5 }
 0x75a   :  { %v2758_v6 = vpop.eup %2757 }
 0x75b   :  { %v970_v7 = vsel %vm495_vm5, %v2758_v6, 0.0 }
 0x75c   :  { %971 = vadd.xlane.f32.xlu1 %v970_v7 }
 0x76a   :  { %1144 = vrot.lane.b32.xlu0 %v3045_v47, %s2867_s22 }
 0x76d   :  { %1094 = vrot.lane.b32.xlu1 %v3040_v42, %s2867_s22 }
 0x76e   :  { %1142 = vrot.lane.b32.xlu0 %v3045_v47, %s2880_s13 }
 0x771   :  { %1092 = vrot.lane.b32.xlu1 %v3040_v42, %s2880_s13 }
 0x7dd   :  { %v969_v8 = vpop.xlane.xlu0 %968 }
 0x7de   :  { %2759 = vrcp.f32 %v969_v8 }
 0x7e1   :  { %v1145_v20 = vpop.permute.xlu0 %1144 }
 0x7e2   :  { %v1150_v23 = vsel %vm400_vm4, %v1145_v20, 0  ;;  %v2729_v20 = vld [vmem:[%s3434_s4 + $0x10] sm:$0xff]  }
 0x7e5   :  { %v972_v9 = vpop.xlane.xlu1 %971  ;;  %v1143_v24 = vpop.permute.xlu0 %1142 }
 0x7e6   :  { %2761 = vrcp.f32 %v972_v9 }
 0x7e9   :  { %v1095_v17 = vpop.permute.xlu1 %1094 }
 0x7ea   :  { %v1100_v19 = vsel %vm400_vm4, %v1095_v17, 0 }
 0x7eb   :  { %v2760_v11 = vpop.eup %2759 }
 0x7ec   :  { %v975_v16 = vmul.f32 %v2760_v11, %v2756_v3 }
 0x7ed   :  { %v1093_v22 = vpop.permute.xlu1 %1092 }
 0x7ee   :  { %v977_v18 = vpack.c.bf16 %v975_v16, %v975_v16 }
 0x7f0   :  { %2624 = vmatmul.mubr.msk.bf16.vlgmr.msra.gmra.mxu0 %vm495_vm5, %v977_v18 }
 0x7f1   :  { %2634 = vmatpush3.bf16.xpose.msra.mxu0 %v1100_v19  ;;  %2635 = vmatprep.mubr.msk.bf16.mxu0 %vm2875_vm2, %v2874_v32 }
 0x7f2   :  { %2645 = vmatprep.subr.bf16.mxu0 %v2874_v32 }
 0x7f3   :  { %v2762_v47 = vpop.eup %2761 }
 0x7f4   :  { %v976_v42 = vmul.f32 %v2762_v47, %v2758_v6 }
 0x7f6   :  { %v978_v21 = vpack.c.bf16 %v976_v42, %v976_v42  ;;  %v2728_v42 = vld [vmem:[%s3434_s4 + $0x18] sm:$0xff]  }
 0x7f8   :  { %2630 = vmatmul.mubr.msk.bf16.vlgmr.msra.gmra.mxu1 %vm495_vm5, %v978_v21  ;;  %2636 = vmatmul.mubr.msk.bf16.vlgmr.msra.gmra.mxu0 %vm400_vm4, %v1093_v22  ;;  %v2730_v21 = vld [vmem:[%s3434_s4 + $0x8] sm:$0xff]  }
 0x7f9   :  { %2640 = vmatpush3.bf16.xpose.msra.mxu1 %v1150_v23  ;;  %2641 = vmatprep.mubr.msk.bf16.mxu1 %vm2875_vm2, %v2874_v32  ;;  %v2731_v23 = vld [vmem:[%s3434_s4] sm:$0xff]  }
 0x7fa   :  { %2651 = vmatprep.subr.bf16.mxu1 %v2874_v32  ;;  %2647 = vmatprep.mubr.msk.bf16.mxu0 %vm2875_vm2, %v2874_v32 }
 0x800   :  { %2642 = vmatmul.mubr.msk.bf16.vlgmr.msra.gmra.mxu1 %vm400_vm4, %v1143_v24 }
 0x801   :  { %2653 = vmatprep.mubr.msk.bf16.mxu1 %vm2875_vm2, %v2874_v32 }
 0x8b0   :  { %v1021_v25 = vpop.f32.mrf.mxu0 }
 0x8b1   :  { %v2512_v2 = vpack.c.bf16 %v1021_v25, %v1021_v25 }
 0x8b2   :  { %v2625_v26 = vpop.f32.mrf.mxu0 }
 0x8b4   :  { %v1024_v27 = vpop.f32.mrf.mxu0 }
 0x8b6   :  { %v2626_v28 = vpop.f32.mrf.mxu0 }
 0x8b8   :  { %v1069_v29 = vpop.f32.mrf.mxu1  ;;  %v1136_v30 = vpop.f32.mrf.mxu0 }
 0x8b9   :  { %v1192_v34 = vsel %vm495_vm5, %v1136_v30, -inf  ;;  %v2513_v1 = vpack.c.bf16 %v1069_v29, %v1069_v29 }
 0x8ba   :  { %1193 = vmax.xlane.f32.xlu1 %v1192_v34  ;;  %v2631_v37 = vpop.f32.mrf.mxu1  ;;  %v2637_v38 = vpop.f32.mrf.mxu0 }
 0x8bc   :  { %v1072_v40 = vpop.f32.mrf.mxu1  ;;  %v1139_v41 = vpop.f32.mrf.mxu0 }
 0x8be   :  { %v2632_v43 = vpop.f32.mrf.mxu1  ;;  %v2638_v44 = vpop.f32.mrf.mxu0 }
 0x8bf   :  { %v2489_v43 = vld [vmem:[%s3435_s5] ss:$0 sm:$0xff] }
 0x8c0   :  { %v1186_v46 = vpop.f32.mrf.mxu1 }
 0x8c1   :  { %v1195_v48 = vsel %vm495_vm5, %v1186_v46, -inf }
 0x8c2   :  { %1196 = vmax.xlane.f32.xlu0 %v1195_v48  ;;  %v2643_v49 = vpop.f32.mrf.mxu1 }
 0x8c4   :  { %v1189_v50 = vpop.f32.mrf.mxu1 }
 0x8c6   :  { %v2644_v51 = vpop.f32.mrf.mxu1 }
 0x943   :  { %v1194_v52 = vpop.xlane.xlu1 %1193 }
 0x944   :  { %v1198_v53 = vsub.f32 %v1136_v30, %v1194_v52 }
 0x946   :  { %v1200_v54 = vmul.f32 1.442695, %v1198_v53 }
 0x948   :  { %2763 = vpow2.f32 %v1200_v54 }
 0x94b   :  { %v1197_v56 = vpop.xlane.xlu0 %1196 }
 0x94c   :  { %v1199_v57 = vsub.f32 %v1186_v46, %v1197_v56  ;;  %v103_v56 = vcombine.high %v3002_v12, %v2874_v32 }
 0x94e   :  { %v1202_v58 = vmul.f32 1.442695, %v1199_v57 }
 0x950   :  { %2765 = vpow2.f32 %v1202_v58 }
 0x955   :  { %v2764_v59 = vpop.eup %2763 }
 0x956   :  { %v1204_v60 = vsel %vm495_vm5, %v2764_v59, 0.0 }
 0x957   :  { %1205 = vadd.xlane.f32.xlu0 %v1204_v60 }
 0x95d   :  { %v2766_v61 = vpop.eup %2765 }
 0x95e   :  { %v1207_v62 = vsel %vm495_vm5, %v2766_v61, 0.0 }
 0x95f   :  { %1208 = vadd.xlane.f32.xlu1 %v1207_v62  ;;  %v112_v62 = vcombine.high %v3005_v13, %v2874_v32 }
 0x96d   :  { %1216 = vrot.lane.b32.xlu0 %v3042_v45, %s2880_s13 }
 0x970   :  { %1264 = vrot.lane.b32.xlu1 %v3059_v55, %s2880_s13 }
 0x971   :  { %848 = vrot.lane.b32.xlu0 %v2511_v63, %s2867_s22  ;;  %v121_v63 = vcombine.high %v3008_v14, %v2874_v32 }
 0x974   :  { %846 = vrot.lane.b32.xlu1 %v2510_v0, %s2867_s22 }
 0x975   :  { %1085 = vrot.lane.b32.xlu0 %v2513_v1, %s2873_s29  ;;  %v130_v1 = vcombine.high %v3011_v15, %v2874_v32 }
 0x978   :  { %1083 = vrot.lane.b32.xlu1 %v2512_v2, %s2873_s29 }
 0x9e0   :  { %v1206_v45 = vpop.xlane.xlu0 %1205 }
 0x9e1   :  { %2767 = vrcp.f32 %v1206_v45 }
 0x9e4   :  { %v1217_v3 = vpop.permute.xlu0 %1216 }
 0x9e5   :  { %v1222_v39 = vsel %vm523_vm3, %v1217_v3, 0 }
 0x9e6   :  { %2646 = vmatpush3.bf16.msra.mxu0 %v1222_v39 }
 0x9e7   :  { %2657 = vmatprep.subr.bf16.mxu0 %v2874_v32 }
 0x9e8   :  { %v1209_v55 = vpop.xlane.xlu1 %1208  ;;  %v849_v5 = vpop.permute.xlu0 %848 }
 0x9e9   :  { %2769 = vrcp.f32 %v1209_v55  ;;  %854 = vst.msk [vmem:[#allocation2 + $0x4] sm:$0xf] %vm852_vm7, %v849_v5 }
 0x9ec   :  { %v1265_v31 = vpop.permute.xlu1 %1264  ;;  %v1086_v6 = vpop.permute.xlu0 %1085 }
 0x9ed   :  { %v1270_v7 = vsel %vm523_vm3, %v1265_v31, 0  ;;  %1091 = vst.msk [vmem:[#allocation2 + $0x4] sm:$0xf] %vm1089_vm8, %v1086_v6 }
 0x9ee   :  { %v2768_v8 = vpop.eup %2767  ;;  %2652 = vmatpush3.bf16.msra.mxu1 %v1270_v7 }
 0x9ef   :  { %v1212_v9 = vmul.f32 %v2768_v8, %v2764_v59  ;;  %2669 = vmatprep.subr.bf16.mxu1 %v2874_v32 }
 0x9f0   :  { %v847_v11 = vpop.permute.xlu1 %846 }
 0x9f1   :  { %853 = vst.msk [vmem:[#allocation2] sm:$0xf] %vm852_vm7, %v847_v11  ;;  %v1214_v16 = vpack.c.bf16 %v1212_v9, %v1212_v9 }
 0x9f3   :  { %2648 = vmatmul.mubr.msk.bf16.vlgmr.msra.gmra.mxu0 %vm495_vm5, %v1214_v16 }
 0x9f4   :  { %v1084_v17 = vpop.permute.xlu1 %1083  ;;  %2665 = vmatprep.mubr.msk.bf16.mxu0 %vm2875_vm2, %v2874_v32  ;;  %2658 = vmatpush3.bf16.msra.mxu0 %v2728_v42  ;;  %v2881_v42 = vmov 269488144  }
 0x9f5   :  { %1090 = vst.msk [vmem:[#allocation2] sm:$0xf] %vm1089_vm8, %v1084_v17  ;;  %2659 = vmatprep.subr.bf16.mxu0 %v2874_v32 }
 0x9f6   :  { %v2770_v18 = vpop.eup %2769 }
 0x9f7   :  { %v1213_v19 = vmul.f32 %v2770_v18, %v2766_v61 }
 0x9f8   :  { %2660 = vmatpush3.bf16.msra.mxu0 %v2729_v20  ;;  %v1528_v20 = vunpack.c.l.s4 %v2881_v42 }
 0x9f9   :  { %v1215_v47 = vpack.c.bf16 %v1213_v19, %v1213_v19  ;;  %2661 = vmatprep.subr.bf16.mxu0 %v2874_v32 }
 0x9fb   :  { %2654 = vmatmul.mubr.msk.bf16.vlgmr.msra.gmra.mxu1 %vm495_vm5, %v1215_v47 }
 0x9fc   :  { %2673 = vmatprep.mubr.msk.bf16.mxu1 %vm2875_vm2, %v2874_v32  ;;  %2662 = vmatpush3.bf16.msra.mxu0 %v2730_v21  ;;  %v2882_v21 = vmov 842150450  }
 0x9fd   :  { %2663 = vmatprep.subr.bf16.mxu0 %v2874_v32 }
 0xa00   :  { %2664 = vmatpush3.bf16.msra.mxu0 %v2731_v23  ;;  %v2883_v23 = vmov 1414812756  }
 0xab3   :  { %v1258_v22 = vpop.f32.mrf.mxu0 }
 0xab4   :  { %v2514_v24 = vpack.c.bf16 %v1258_v22, %v1258_v22  ;;  %v1535_v22 = vunpack.c.l.s4 %v2882_v21  ;;  %v3312_v21 = vld [vmem:[%s3440_s10] sm:$0xf] }
 0xab5   :  { %v2649_v25 = vpop.f32.mrf.mxu0 }
 0xab6   :  { %1320 = vrot.lane.b32.xlu1 %v2514_v24, %s2877_s30  ;;  %v1542_v24 = vunpack.c.l.s4 %v2883_v23  ;;  %v2884_v25 = vmov 1987475062  }
 0xab7   :  { %v1261_v26 = vpop.f32.mrf.mxu0 }
 0xab8   :  { %v1549_v26 = vunpack.c.l.s4 %v2884_v25  ;;  %v1740_v25 = vrot.slane %v3312_v21, %v291_v33 }
 0xab9   :  { %v2650_v27 = vpop.f32.mrf.mxu0 }
 0xaba   :  { %v1529_v27 = vunpack.c.0.s8 %v1528_v20 }
 0xabb   :  { %v1306_v28 = vpop.f32.mrf.mxu1 }
 0xabc   :  { %v2515_v29 = vpack.c.bf16 %v1306_v28, %v1306_v28  ;;  %v1536_v28 = vunpack.c.0.s8 %v1535_v22 }
 0xabd   :  { %v2655_v30 = vpop.f32.mrf.mxu1 }
 0xabe   :  { %1322 = vrot.lane.b32.xlu0 %v2515_v29, %s2877_s30  ;;  %v1543_v29 = vunpack.c.0.s8 %v1542_v24  ;;  %v1550_v30 = vunpack.c.0.s8 %v1549_v26 }
 0xabf   :  { %v1309_v34 = vpop.f32.mrf.mxu1 }
 0xac0   :  { %v3244_v34 = vsub.s32 %v1529_v27, %v2960_v4  ;;  %v1774_v27 = vrot.slane %v3312_v21, %v295_v36 }
 0xac1   :  { %v2656_v37 = vpop.f32.mrf.mxu1 }
 0xac2   :  { %v3247_v37 = vsub.s32 %v1536_v28, %v2960_v4  ;;  %v1742_v28 = vcombine.high %v1740_v25, %v1740_v25 }
 0xb28   :  { %v1321_v38 = vpop.permute.xlu1 %1320 }
 0xb29   :  { %1327 = vst.msk [vmem:[#allocation2] sm:$0xf] %vm1326_vm9, %v1321_v38  ;;  %v3250_v38 = vsub.s32 %v1543_v29, %v2960_v4  ;;  %v1776_v29 = vcombine.high %v1774_v27, %v1774_v27 }
 0xb30   :  { %v1323_v40 = vpop.permute.xlu0 %1322 }
 0xb31   :  { %1328 = vst.msk [vmem:[#allocation2 + $0x4] sm:$0xf] %vm1326_vm9, %v1323_v40  ;;  %v3253_v40 = vsub.s32 %v1550_v30, %v2960_v4  ;;  %v1749_v30 = vrot.slane %v1740_v25, %v2978_v35 }
 0xb38   :  { %v2732_v41 = vld [vmem:[#allocation2] sm:$0xff]  }
 0xb39   :  { %2666 = vmatmul.mubr.msk.bf16.vlgmr.msra.gmra.mxu0 %vm339_vm1, %v2732_v41 }
 0xbf9   :  { %v1412_v44 = vpop.f32.mrf.mxu0 }
 0xbfa   :  { %v1413_v46 = vadd.f32 %v2489_v43, %v1412_v44 }
 0xbfb   :  { %v2667_v48 = vpop.f32.mrf.mxu0 }
 0xbfc   :  { %v1422_v49 = vcombine.high %v1413_v46, %v1413_v46  ;;  %v1429_v50 = vrot.slane %v1413_v46, %v2978_v35 }
 0xbfd   :  { %v1415_v51 = vpop.f32.mrf.mxu0 }
 0xbfe   :  { %v1436_v52 = vrot.slane %v1422_v49, %v2978_v35  ;;  %v1437_v53 = vcombine.high %v1429_v50, %v1429_v50  ;;  %v1416_v54 = vadd.f32 %v2489_v43, %v1415_v51  ;;  %v1464_v59 = vadd.f32 %v1429_v50, %v3002_v12 }
 0xbff   :  { %v2668_v57 = vpop.f32.mrf.mxu0 }
 0xc00   :  { %v1438_v58 = vcombine.high %v1436_v52, %v1436_v52  ;;  %v1465_v60 = vadd.f32 %v1437_v53, %v3005_v13  ;;  %v1439_v61 = vcombine.high %v1416_v54, %v1416_v54  ;;  %v1446_v0 = vrot.slane %v1416_v54, %v2978_v35 }
 0xc01   :  { %v1466_v2 = vadd.f32 %v1436_v52, %v3008_v14 }
 0xc02   :  { %v1453_v45 = vrot.slane %v1439_v61, %v2978_v35  ;;  %v1467_v12 = vadd.f32 %v1438_v58, %v3011_v15  ;;  %v1480_v3 = vcombine.low %v1464_v59, %v1465_v60  ;;  %v1454_v39 = vcombine.high %v1446_v0, %v1446_v0 }
 0xc03   :  { %v1468_v31 = vadd.f32 %v1446_v0, %v103_v56 }
 0xc04   :  { %v1455_v55 = vcombine.high %v1453_v45, %v1453_v45  ;;  %v1481_v5 = vcombine.low %v1466_v2, %v1467_v12  ;;  %v1469_v13 = vadd.f32 %v1454_v39, %v112_v62  ;;  %v1470_v6 = vadd.f32 %v1453_v45, %v121_v63 }
 0xc05   :  { %v1488_v7 = vrot.slane %v1480_v3, %v2978_v35 }
 0xc06   :  { %v1495_v8 = vrot.slane %v1481_v5, %v2978_v35  ;;  %v1471_v9 = vadd.f32 %v1455_v55, %v130_v1  ;;  %v1497_v11 = vcombine.low %v1468_v31, %v1469_v13 }
 0xc08   :  { %v1496_v16 = vcombine.low %v1488_v7, %v1495_v8  ;;  %v1498_v17 = vcombine.low %v1470_v6, %v1471_v9  ;;  %v1505_v18 = vrot.slane %v1497_v11, %v2978_v35 }
 0xc0a   :  { %v1516_v14 = vsel %vm275_vm0, %v1496_v16, 0.0  ;;  %v1512_v15 = vrot.slane %v1498_v17, %v2978_v35 }
 0xc0b   :  { %1517 = vadd.xlane.f32.xlu1 %v1516_v14 }
 0xc0c   :  { %v1513_v19 = vcombine.low %v1505_v18, %v1512_v15 }
 0xc0e   :  { %v1519_v47 = vsel %vm275_vm0, %v1513_v19, 0.0  ;;  %v2733_v19 = vld [vmem:[%s3436_s6 + $0x8] sm:$0xff]  }
 0xc0f   :  { %1520 = vadd.xlane.f32.xlu0 %v1519_v47  ;;  %2670 = vmatpush3.bf16.msra.mxu1 %v2733_v19  ;;  %v2734_v47 = vld [vmem:[%s3436_s6] sm:$0xff]  }
 0xc10   :  { %2671 = vmatprep.subr.bf16.mxu1 %v2874_v32 }
 0xc13   :  { %2672 = vmatpush3.bf16.msra.mxu1 %v2734_v47 }
 0xc14   :  { %2677 = vmatprep.subr.bf16.mxu1 %v2874_v32 }
 0xc94   :  { %v1518_v41 = vpop.xlane.xlu1 %1517 }
 0xc95   :  { %v1523_v43 = vmul.f32 0.03125, %v1518_v41  ;;  %v1756_v41 = vrot.slane %v1742_v28, %v2978_v35 }
 0xc97   :  { %v1533_v44 = vrot.slane %v1523_v43, %v3244_v34  ;;  %v1540_v46 = vrot.slane %v1523_v43, %v3247_v37  ;;  %v1547_v48 = vrot.slane %v1523_v43, %v3250_v38  ;;  %v1554_v49 = vrot.slane %v1523_v43, %v3253_v40 }
 0xc98   :  { %v1521_v50 = vpop.xlane.xlu0 %1520  ;;  %v1783_v43 = vrot.slane %v1774_v27, %v2978_v35  ;;  %v2735_v27 = vld [vmem:[%s3438_s8 + $0x18] sm:$0xff]  }
 0xc99   :  { %v1524_v51 = vmul.f32 0.03125, %v1521_v50  ;;  %v3259_v52 = vsub.f32 %v1464_v59, %v1533_v44  ;;  %v3261_v53 = vsub.f32 %v1465_v60, %v1540_v46  ;;  %v3263_v54 = vsub.f32 %v1466_v2, %v1547_v48 }
 0xc9a   :  { %v3265_v56 = vsub.f32 %v1467_v12, %v1554_v49  ;;  %v1790_v44 = vrot.slane %v1776_v29, %v2978_v35  ;;  %v1757_v48 = vcombine.high %v1749_v30, %v1749_v30  ;;  %v1758_v49 = vcombine.high %v1756_v41, %v1756_v41  ;;  %v2736_v29 = vld [vmem:[%s3438_s8 + $0x10] sm:$0xff]  }
 0xc9b   :  { %v1561_v57 = vrot.slane %v1524_v51, %v3244_v34  ;;  %v1568_v58 = vrot.slane %v1524_v51, %v3247_v37  ;;  %v1575_v61 = vrot.slane %v1524_v51, %v3250_v38  ;;  %v1582_v62 = vrot.slane %v1524_v51, %v3253_v40 }
 0xc9c   :  { %v1599_v63 = vmul.f32 %v3259_v52, %v3259_v52  ;;  %v1600_v59 = vmul.f32 %v3261_v53, %v3261_v53  ;;  %v1601_v60 = vmul.f32 %v3263_v54, %v3263_v54  ;;  %v1602_v0 = vmul.f32 %v3265_v56, %v3265_v56 }
 0xc9d   :  { %v3279_v1 = vsub.f32 %v1468_v31, %v1561_v57  ;;  %v3281_v2 = vsub.f32 %v1469_v13, %v1568_v58  ;;  %v3283_v45 = vsub.f32 %v1470_v6, %v1575_v61  ;;  %v3285_v12 = vsub.f32 %v1471_v9, %v1582_v62 }
 0xc9e   :  { %v1615_v3 = vcombine.low %v1599_v63, %v1600_v59  ;;  %v1616_v39 = vcombine.low %v1601_v60, %v1602_v0  ;;  %v1791_v57 = vcombine.high %v1783_v43, %v1783_v43  ;;  %v1792_v58 = vcombine.high %v1790_v44, %v1790_v44 }
 0xc9f   :  { %v1603_v55 = vmul.f32 %v3279_v1, %v3279_v1  ;;  %v1604_v5 = vmul.f32 %v3281_v2, %v3281_v2  ;;  %v1605_v7 = vmul.f32 %v3283_v45, %v3283_v45  ;;  %v1606_v31 = vmul.f32 %v3285_v12, %v3285_v12 }
 0xca0   :  { %v1623_v13 = vrot.slane %v1615_v3, %v2978_v35  ;;  %v1630_v6 = vrot.slane %v1616_v39, %v2978_v35 }
 0xca1   :  { %v1632_v8 = vcombine.low %v1603_v55, %v1604_v5  ;;  %v1633_v9 = vcombine.low %v1605_v7, %v1606_v31 }
 0xca2   :  { %v1631_v11 = vcombine.low %v1623_v13, %v1630_v6 }
 0xca3   :  { %v1640_v16 = vrot.slane %v1632_v8, %v2978_v35  ;;  %v1647_v17 = vrot.slane %v1633_v9, %v2978_v35 }
 0xca4   :  { %v1651_v14 = vsel %vm275_vm0, %v1631_v11, 0.0 }
 0xca5   :  { %1652 = vadd.xlane.f32.xlu0 %v1651_v14  ;;  %v1648_v18 = vcombine.low %v1640_v16, %v1647_v17 }
 0xca7   :  { %v1654_v15 = vsel %vm275_vm0, %v1648_v18, 0.0 }
 0xca8   :  { %1655 = vadd.xlane.f32.xlu1 %v1654_v15 }
 0xd2e   :  { %v1653_v42 = vpop.xlane.xlu0 %1652 }
 0xd2f   :  { %v1657_v20 = vmul.f32 0.03125, %v1653_v42 }
 0xd31   :  { %v1659_v22 = vadd.f32 1e-05, %v1657_v20  ;;  %v1656_v23 = vpop.xlane.xlu1 %1655 }
 0xd32   :  { %v1658_v24 = vmul.f32 0.03125, %v1656_v23 }
 0xd33   :  { %2771 = vrsqrt.f32 %v1659_v22 }
 0xd34   :  { %v1660_v26 = vadd.f32 1e-05, %v1658_v24 }
 0xd36   :  { %2773 = vrsqrt.f32 %v1660_v26 }
 0xd40   :  { %v2772_v46 = vpop.eup %2771 }
 0xd41   :  { %v1671_v33 = vrot.slane %v2772_v46, %v3244_v34  ;;  %v1678_v50 = vrot.slane %v2772_v46, %v3247_v37  ;;  %v1685_v36 = vrot.slane %v2772_v46, %v3250_v38  ;;  %v1692_v51 = vrot.slane %v2772_v46, %v3253_v40 }
 0xd43   :  { %v2774_v61 = vpop.eup %2773  ;;  %v1729_v62 = vmul.f32 %v1671_v33, %v3259_v52  ;;  %v1730_v63 = vmul.f32 %v1678_v50, %v3261_v53  ;;  %v1731_v59 = vmul.f32 %v1685_v36, %v3263_v54  ;;  %v1732_v60 = vmul.f32 %v1692_v51, %v3265_v56 }
 0xd44   :  { %v1699_v0 = vrot.slane %v2774_v61, %v3244_v34  ;;  %v1706_v3 = vrot.slane %v2774_v61, %v3247_v37  ;;  %v1713_v39 = vrot.slane %v2774_v61, %v3250_v38  ;;  %v1720_v55 = vrot.slane %v2774_v61, %v3253_v40 }
 0xd45   :  { %v1763_v5 = vmul.f32 %v1749_v30, %v1729_v62  ;;  %v1764_v7 = vmul.f32 %v1757_v48, %v1730_v63  ;;  %v1765_v31 = vmul.f32 %v1756_v41, %v1731_v59  ;;  %v1766_v13 = vmul.f32 %v1758_v49, %v1732_v60 }
 0xd46   :  { %v1733_v52 = vmul.f32 %v1699_v0, %v3279_v1  ;;  %v1734_v53 = vmul.f32 %v1706_v3, %v3281_v2  ;;  %v1735_v54 = vmul.f32 %v1713_v39, %v3283_v45  ;;  %v1736_v56 = vmul.f32 %v1720_v55, %v3285_v12 }
 0xd47   :  { %v1797_v6 = vadd.f32 %v1783_v43, %v1763_v5  ;;  %v1798_v8 = vadd.f32 %v1791_v57, %v1764_v7  ;;  %v1799_v9 = vadd.f32 %v1790_v44, %v1765_v31  ;;  %v1800_v11 = vadd.f32 %v1792_v58, %v1766_v13 }
 0xd48   :  { %v1767_v16 = vmul.f32 %v1749_v30, %v1733_v52  ;;  %v1768_v17 = vmul.f32 %v1757_v48, %v1734_v53  ;;  %v1769_v14 = vmul.f32 %v1756_v41, %v1735_v54  ;;  %v1770_v18 = vmul.f32 %v1758_v49, %v1736_v56  ;;  %v2737_v30 = vld [vmem:[%s3438_s8 + $0x8] sm:$0xff]   ;;  %v2738_v41 = vld [vmem:[%s3438_s8] sm:$0xff]  }
 0xd49   :  { %v1813_v15 = vcombine.low %v1797_v6, %v1798_v8  ;;  %v1814_v19 = vcombine.low %v1799_v9, %v1800_v11 }
 0xd4a   :  { %v1801_v47 = vadd.f32 %v1783_v43, %v1767_v16  ;;  %v1802_v42 = vadd.f32 %v1791_v57, %v1768_v17  ;;  %v1803_v20 = vadd.f32 %v1790_v44, %v1769_v14  ;;  %v1804_v1 = vadd.f32 %v1792_v58, %v1770_v18  ;;  %v2496_v43 = vld [vmem:[%s3437_s7] ss:$0 sm:$0xff]  ;;  %s2885_s7 = smov [#allocation9]  }
 0xd4b   :  { %v1821_v2 = vrot.slane %v1813_v15, %v2978_v35  ;;  %v1828_v45 = vrot.slane %v1814_v19, %v2978_v35  ;;  %v2500_v58 = vld [vmem:[%s3439_s9] ss:$0 sm:$0xff]  ;;  %s2437_s8 = sshll.u32 %s2885_s7, 4  ;;  %s2438_s8 = int_to_ptr.vmem [resolvable:$true] %s2437_s8 }
 0xd4c   :  { %v1830_v22 = vcombine.low %v1801_v47, %v1802_v42  ;;  %v1831_v12 = vcombine.low %v1803_v20, %v1804_v1  ;;  %s2839_s9 = scalar_lea.vmem %s2438_s8, 256  ;;  %p2844_p2 = scmp.lt.s32.totalorder %s2438_s8, %s2438_s8 }
 0xd4d   :  { %v1829_v25 = vcombine.low %v1821_v2, %v1828_v45  ;;  %p2840_p1 = scmp.ne.s32.totalorder %s2438_s8, %s2839_s9  ;;  %p2845_p3 = scmp.lt.s32.totalorder %s2839_s9, %s2839_s9 }
 0xd4e   :  { %v1838_v23 = vrot.slane %v1830_v22, %v2978_v35  ;;  %v1845_v24 = vrot.slane %v1831_v12, %v2978_v35 }
 0xd4f   :  { %p2846_p4 = por %p2845_p3, %p2844_p2 }
 0xd50   :  { %v1846_v26 = vcombine.low %v1838_v23, %v1845_v24 }
 0xd51   :  { %p2847_p5 = pnand %p2846_p4, %p2840_p1 }
 0xd52   :  { %v1849_v28 = vpack.c.bf16 %v1846_v26, %v1829_v25 }
 0xd54   :  { %2674 = vmatmul.mubr.msk.bf16.vlgmr.msra.gmra.mxu1 %vm275_vm0, %v1849_v28 }
 0xd55   :  { %2678 = vmatpush3.bf16.msra.mxu1 %v2735_v27  ;;  %2685 = vmatprep.mubr.msk.bf16.mxu1 %vm2875_vm2, %v2874_v32 }
 0xd56   :  { %2679 = vmatprep.subr.bf16.mxu1 %v2874_v32 }
 0xd59   :  { %2680 = vmatpush3.bf16.msra.mxu1 %v2736_v29 }
 0xd5a   :  { %2681 = vmatprep.subr.bf16.mxu1 %v2874_v32 }
 0xd5d   :  { %2682 = vmatpush3.bf16.msra.mxu1 %v2737_v30 }
 0xd5e   :  { %2683 = vmatprep.subr.bf16.mxu1 %v2874_v32 }
 0xd61   :  { %2684 = vmatpush3.bf16.msra.mxu1 %v2738_v41 }
 0xe14   :  { %v1910_v44 = vpop.f32.mrf.mxu1 }
 0xe15   :  { %v1911_v48 = vadd.f32 %v2496_v43, %v1910_v44 }
 0xe16   :  { %v2675_v46 = vpop.f32.mrf.mxu1 }
 0xe17   :  { %v1917_v36 = vmax.f32 %v1911_v48, 0.0 }
 0xe18   :  { %v1913_v49 = vpop.f32.mrf.mxu1 }
 0xe19   :  { %v1914_v33 = vadd.f32 %v2496_v43, %v1913_v49 }
 0xe1a   :  { %v2676_v50 = vpop.f32.mrf.mxu1 }
 0xe1b   :  { %v1918_v51 = vmax.f32 %v1914_v33, 0.0 }
 0xe1d   :  { %v1919_v57 = vpack.c.bf16 %v1918_v51, %v1917_v36 }
 0xe1f   :  { %2686 = vmatmul.mubr.msk.bf16.vlgmr.msra.gmra.mxu1 %vm339_vm1, %v1919_v57 }
 0xedf   :  { %v1996_v61 = vpop.f32.mrf.mxu1 }
 0xee0   :  { %v1997_v62 = vadd.f32 %v2500_v58, %v1996_v61 }
 0xee1   :  { %v2687_v63 = vpop.f32.mrf.mxu1 }
 0xee2   :  { %v2005_v59 = vcombine.high %v1997_v62, %v1997_v62  ;;  %v2012_v60 = vrot.slane %v1997_v62, %v2978_v35 }
 0xee3   :  { %v1999_v0 = vpop.f32.mrf.mxu1 }
 0xee4   :  { %v2019_v3 = vrot.slane %v2005_v59, %v2978_v35  ;;  %v2020_v39 = vcombine.high %v2012_v60, %v2012_v60  ;;  %v2000_v55 = vadd.f32 %v2500_v58, %v1999_v0  ;;  %v2047_v31 = vadd.f32 %v2012_v60, %v1797_v6 }
 0xee5   :  { %v2688_v5 = vpop.f32.mrf.mxu1 }
 0xee6   :  { %v2021_v7 = vcombine.high %v2019_v3, %v2019_v3  ;;  %v2048_v13 = vadd.f32 %v2020_v39, %v1798_v8  ;;  %v2022_v52 = vcombine.high %v2000_v55, %v2000_v55  ;;  %v2029_v53 = vrot.slane %v2000_v55, %v2978_v35 }
 0xee7   :  { %v2049_v54 = vadd.f32 %v2019_v3, %v1799_v9 }
 0xee8   :  { %v2036_v56 = vrot.slane %v2022_v52, %v2978_v35  ;;  %v2050_v16 = vadd.f32 %v2021_v7, %v1800_v11  ;;  %v2063_v17 = vcombine.low %v2047_v31, %v2048_v13  ;;  %v2037_v14 = vcombine.high %v2029_v53, %v2029_v53 }
 0xee9   :  { %v2051_v19 = vadd.f32 %v2029_v53, %v1801_v47 }
 0xeea   :  { %v2038_v18 = vcombine.high %v2036_v56, %v2036_v56  ;;  %v2064_v15 = vcombine.low %v2049_v54, %v2050_v16  ;;  %v2052_v2 = vadd.f32 %v2037_v14, %v1802_v42  ;;  %v2053_v45 = vadd.f32 %v2036_v56, %v1803_v20 }
 0xeeb   :  { %v2071_v22 = vrot.slane %v2063_v17, %v2978_v35 }
 0xeec   :  { %v2078_v12 = vrot.slane %v2064_v15, %v2978_v35  ;;  %v2054_v6 = vadd.f32 %v2038_v18, %v1804_v1  ;;  %v2080_v8 = vcombine.low %v2051_v19, %v2052_v2 }
 0xeee   :  { %v2079_v23 = vcombine.low %v2071_v22, %v2078_v12  ;;  %v2081_v24 = vcombine.low %v2053_v45, %v2054_v6  ;;  %v2088_v25 = vrot.slane %v2080_v8, %v2978_v35  ;;  %v2355_v12 = vsub.s32 3, %v2960_v4 }
 0xef0   :  { %v2099_v9 = vsel %vm275_vm0, %v2079_v23, 0.0  ;;  %v2095_v11 = vrot.slane %v2081_v24, %v2978_v35  ;;  %v2356_v24 = vrot.slane %v3312_v21, %v2355_v12 }
 0xef1   :  { %2100 = vadd.xlane.f32.xlu0 %v2099_v9 }
 0xef2   :  { %v2096_v26 = vcombine.low %v2088_v25, %v2095_v11  ;;  %v2358_v25 = vcombine.high %v2356_v24, %v2356_v24 }
 0xef4   :  { %v2102_v47 = vsel %vm275_vm0, %v2096_v26, 0.0 }
 0xef5   :  { %2103 = vadd.xlane.f32.xlu1 %v2102_v47  ;;  %v2365_v47 = vrot.slane %v2356_v24, %v2978_v35 }
 0xf7a   :  { %v2101_v42 = vpop.xlane.xlu0 %2100 }
 0xf7b   :  { %v2105_v20 = vmul.f32 0.03125, %v2101_v42  ;;  %v2372_v42 = vrot.slane %v2358_v25, %v2978_v35 }
 0xf7d   :  { %v2115_v27 = vrot.slane %v2105_v20, %v3244_v34  ;;  %v2122_v1 = vrot.slane %v2105_v20, %v3247_v37  ;;  %v2129_v28 = vrot.slane %v2105_v20, %v3250_v38  ;;  %v2136_v29 = vrot.slane %v2105_v20, %v3253_v40 }
 0xf7e   :  { %v2104_v30 = vpop.xlane.xlu1 %2103 }
 0xf7f   :  { %v2106_v41 = vmul.f32 0.03125, %v2104_v30  ;;  %v2173_v43 = vsub.f32 %v2047_v31, %v2115_v27  ;;  %v2174_v44 = vsub.f32 %v2048_v13, %v2122_v1  ;;  %v2175_v46 = vsub.f32 %v2049_v54, %v2129_v28 }
 0xf80   :  { %v2176_v48 = vsub.f32 %v2050_v16, %v2136_v29  ;;  %v2373_v30 = vcombine.high %v2365_v47, %v2365_v47 }
 0xf81   :  { %v2143_v49 = vrot.slane %v2106_v41, %v3244_v34  ;;  %v2150_v33 = vrot.slane %v2106_v41, %v3247_v37  ;;  %v2157_v50 = vrot.slane %v2106_v41, %v3250_v38  ;;  %v2164_v36 = vrot.slane %v2106_v41, %v3253_v40 }
 0xf82   :  { %v2181_v51 = vmul.f32 %v2173_v43, %v2173_v43  ;;  %v2182_v57 = vmul.f32 %v2174_v44, %v2174_v44  ;;  %v2183_v58 = vmul.f32 %v2175_v46, %v2175_v46  ;;  %v2184_v61 = vmul.f32 %v2176_v48, %v2176_v48 }
 0xf83   :  { %v2177_v62 = vsub.f32 %v2051_v19, %v2143_v49  ;;  %v2178_v63 = vsub.f32 %v2052_v2, %v2150_v33  ;;  %v2179_v59 = vsub.f32 %v2053_v45, %v2157_v50  ;;  %v2180_v60 = vsub.f32 %v2054_v6, %v2164_v36 }
 0xf84   :  { %v2197_v0 = vcombine.low %v2181_v51, %v2182_v57  ;;  %v2198_v3 = vcombine.low %v2183_v58, %v2184_v61  ;;  %v2321_v2 = vsub.s32 2, %v2960_v4  ;;  %v2374_v41 = vcombine.high %v2372_v42, %v2372_v42 }
 0xf85   :  { %v2185_v39 = vmul.f32 %v2177_v62, %v2177_v62  ;;  %v2186_v55 = vmul.f32 %v2178_v63, %v2178_v63  ;;  %v2187_v5 = vmul.f32 %v2179_v59, %v2179_v59  ;;  %v2188_v7 = vmul.f32 %v2180_v60, %v2180_v60 }
 0xf86   :  { %v2205_v31 = vrot.slane %v2197_v0, %v2978_v35  ;;  %v2212_v13 = vrot.slane %v2198_v3, %v2978_v35  ;;  %v2322_v8 = vrot.slane %v3312_v21, %v2321_v2 }
 0xf87   :  { %v2214_v52 = vcombine.low %v2185_v39, %v2186_v55  ;;  %v2215_v53 = vcombine.low %v2187_v5, %v2188_v7 }
 0xf88   :  { %v2213_v54 = vcombine.low %v2205_v31, %v2212_v13  ;;  %v2324_v9 = vcombine.high %v2322_v8, %v2322_v8  ;;  %v2331_v11 = vrot.slane %v2322_v8, %v2978_v35 }
 0xf89   :  { %v2222_v56 = vrot.slane %v2214_v52, %v2978_v35  ;;  %v2229_v16 = vrot.slane %v2215_v53, %v2978_v35 }
 0xf8a   :  { %v2233_v17 = vsel %vm275_vm0, %v2213_v54, 0.0  ;;  %v2338_v26 = vrot.slane %v2324_v9, %v2978_v35  ;;  %v2339_v4 = vcombine.high %v2331_v11, %v2331_v11 }
 0xf8b   :  { %2234 = vadd.xlane.f32.xlu0 %v2233_v17  ;;  %v2230_v14 = vcombine.low %v2222_v56, %v2229_v16 }
 0xf8c   :  { %v2340_v27 = vcombine.high %v2338_v26, %v2338_v26 }
 0xf8d   :  { %v2236_v18 = vsel %vm275_vm0, %v2230_v14, 0.0 }
 0xf8e   :  { %2237 = vadd.xlane.f32.xlu1 %v2236_v18 }
0x1014   :  { %v2235_v15 = vpop.xlane.xlu0 %2234 }
0x1015   :  { %v2239_v19 = vmul.f32 0.03125, %v2235_v15 }
0x1017   :  { %v2241_v45 = vadd.f32 1e-05, %v2239_v19  ;;  %v2238_v22 = vpop.xlane.xlu1 %2237 }
0x1018   :  { %v2240_v6 = vmul.f32 0.03125, %v2238_v22 }
0x1019   :  { %2775 = vrsqrt.f32 %v2241_v45 }
0x101a   :  { %v2242_v23 = vadd.f32 1e-05, %v2240_v6 }
0x101c   :  { %2777 = vrsqrt.f32 %v2242_v23 }
0x1026   :  { %v2776_v20 = vpop.eup %2775 }
0x1027   :  { %v2253_v1 = vrot.slane %v2776_v20, %v3244_v34  ;;  %v2260_v28 = vrot.slane %v2776_v20, %v3247_v37  ;;  %v2267_v21 = vrot.slane %v2776_v20, %v3250_v38  ;;  %v2274_v29 = vrot.slane %v2776_v20, %v3253_v40 }
0x1029   :  { %v2778_v49 = vpop.eup %2777  ;;  %v2311_v33 = vmul.f32 %v2253_v1, %v2173_v43  ;;  %v2312_v50 = vmul.f32 %v2260_v28, %v2174_v44  ;;  %v2313_v36 = vmul.f32 %v2267_v21, %v2175_v46  ;;  %v2314_v51 = vmul.f32 %v2274_v29, %v2176_v48 }
0x102a   :  { %v2281_v35 = vrot.slane %v2778_v49, %v3244_v34  ;;  %v2288_v57 = vrot.slane %v2778_v49, %v3247_v37  ;;  %v2295_v58 = vrot.slane %v2778_v49, %v3250_v38  ;;  %v2302_v61 = vrot.slane %v2778_v49, %v3253_v40 }
0x102b   :  { %v2345_v0 = vmul.f32 %v2331_v11, %v2311_v33  ;;  %v2346_v3 = vmul.f32 %v2339_v4, %v2312_v50  ;;  %v2347_v39 = vmul.f32 %v2338_v26, %v2313_v36  ;;  %v2348_v55 = vmul.f32 %v2340_v27, %v2314_v51 }
0x102c   :  { %v2315_v5 = vmul.f32 %v2281_v35, %v2177_v62  ;;  %v2316_v7 = vmul.f32 %v2288_v57, %v2178_v63  ;;  %v2317_v31 = vmul.f32 %v2295_v58, %v2179_v59  ;;  %v2318_v13 = vmul.f32 %v2302_v61, %v2180_v60 }
0x102d   :  { %v2379_v52 = vadd.f32 %v2365_v47, %v2345_v0  ;;  %v2380_v34 = vadd.f32 %v2373_v30, %v2346_v3  ;;  %v2381_v53 = vadd.f32 %v2372_v42, %v2347_v39  ;;  %v2382_v37 = vadd.f32 %v2374_v41, %v2348_v55 }
0x102e   :  { %v2349_v43 = vmul.f32 %v2331_v11, %v2315_v5  ;;  %v2350_v44 = vmul.f32 %v2339_v4, %v2316_v7  ;;  %v2351_v46 = vmul.f32 %v2338_v26, %v2317_v31  ;;  %v2352_v48 = vmul.f32 %v2340_v27, %v2318_v13 }
0x1030   :  { %v2383_v54 = vadd.f32 %v2365_v47, %v2349_v43  ;;  %v2384_v38 = vadd.f32 %v2373_v30, %v2350_v44  ;;  %v2385_v56 = vadd.f32 %v2372_v42, %v2351_v46  ;;  %v2386_v40 = vadd.f32 %v2374_v41, %v2352_v48 }
0x1032   :  { %v2387_v16 = vcombine.low %v2379_v52, %v2383_v54  ;;  %v2396_v17 = vcombine.low %v2380_v34, %v2384_v38  ;;  %v2405_v14 = vcombine.low %v2381_v53, %v2385_v56  ;;  %v2414_v18 = vcombine.low %v2382_v37, %v2386_v40 }
0x1034   :  { %v2394_v62 = vrot.slane %v2387_v16, %v2963_v10  ;;  %v2403_v63 = vrot.slane %v2396_v17, %v2963_v10  ;;  %v2412_v59 = vrot.slane %v2405_v14, %v2963_v10  ;;  %v2421_v60 = vrot.slane %v2414_v18, %v2963_v10 }
0x1036   :  { %v2395_v15 = vcombine.high %v2394_v62, %v2874_v32  ;;  %v2404_v19 = vcombine.high %v2403_v63, %v2874_v32  ;;  %v2413_v2 = vcombine.high %v2412_v59, %v2874_v32  ;;  %v2422_v45 = vcombine.high %v2421_v60, %v2874_v32  ;;  %2424 = vst.msk [vmem:[#allocation9] sm:$0x3] %vm2423_vm10, %v2394_v62 }
0x1037   :  { %2426 = vst.msk [vmem:[#allocation9 + $0x4] sm:$0x3] %vm2423_vm10, %v2403_v63  ;;  %2428 = vst.msk [vmem:[#allocation9 + $0x8] sm:$0x3] %vm2423_vm10, %v2412_v59 }
0x1038   :  { %2430 = vst.msk [vmem:[#allocation9 + $0xc] sm:$0x3] %vm2423_vm10, %v2421_v60  ;;  %2425 = vst.msk [vmem:[#allocation9 + $0x2] sm:$0x3] %vm2423_vm10, %v2395_v15 }
0x1039   :  { %2427 = vst.msk [vmem:[#allocation9 + $0x6] sm:$0x3] %vm2423_vm10, %v2404_v19  ;;  %2429 = vst.msk [vmem:[#allocation9 + $0xa] sm:$0x3] %vm2423_vm10, %v2413_v2 }
0x103a   :  { %2431 = vst.msk [vmem:[#allocation9 + $0xe] sm:$0x3] %vm2423_vm10, %v2422_v45 }
0x103b   :  { %2850 = shalt.err (!%p2847_p5)
}
0x103c   :  { %s2886_s3 = smov 2  }
0x103d   :  { %2443 = dma.vmem_to_hbm [thread:$0]  %s2438_s8, 256, %s3441_s11, [#allocation5], %s2873_s29, %s2873_s29, %s2886_s3  }
0x103e   :  { %2863 = dma.done.wait [#allocation5], 256  }
0x103f   :  { %2864 = vsyncadd [#allocation5], 4294967040 }
0x1040   :  { %2447 = vsyncpa [#allocation4], 1 }
0x1041   :  { %2448 = vsyncpa [#allocation7], 1 }
0x1042   :  { %2449 = vsyncpa [#allocation5], 1 }

</bundles_post_ra>
